<compile_context>
chip_gen: v7x
topology: tpu7x:2x2x1
jax: 0.10.0
libtpu: 0.0.40
codegen_flags: <defaults>
</compile_context>

<pallas_src>
import math

import jax
import jax.numpy as jnp
from jax.experimental import pallas as pl
from jax.experimental.pallas import tpu as pltpu  # noqa: F401  (kept for extensions)

# ---- small synthetic "bert_model" config ----
VOCAB = 100
MAX_POS = 16
HIDDEN = 32
NUM_HEADS = 2
HEAD_DIM = HIDDEN // NUM_HEADS
INTERMEDIATE = 64
NUM_LAYERS = 2
NUM_LABELS = 4
LN_EPS = 1e-12
VOCAB_PAD = 128   # one-hot gather lane width
LANE = 128        # lane-dense packing width for bias rows / logits

assert VOCAB <= VOCAB_PAD
assert 3 * HIDDEN <= LANE and INTERMEDIATE <= LANE and NUM_LABELS <= LANE


def _layernorm(x, gamma, beta):
    mean = jnp.mean(x, axis=-1, keepdims=True)
    var = jnp.mean(jnp.square(x - mean), axis=-1, keepdims=True)
    return (x - mean) * jax.lax.rsqrt(var + LN_EPS) * gamma + beta


# ---------------- fused Pallas kernel ----------------
#
# Inputs (all whole-array VMEM blocks, no grid):
#   ids_ref     [B*S, 1]  int32   token ids
#   mask_ref    [B, 1, S] int32   attention mask (1 = keep)
#   word_ref    [VOCAB_PAD, H]    word-embedding table (zero-padded rows)
#   postype_ref [MAX_POS, H]      pos_emb + type_emb[0]
#   embln_ref   [2, H]            row0 = embedding-LN gamma, row1 = beta
#   wqkv_ref    [L, H, 3H]        fused Q|K|V weight (Q pre-scaled by 1/sqrt(HD))
#   wo_ref      [L, H, H]         attention output projection
#   wi_ref      [L, H, I], wo2_ref [L, I, H]   FFN weights
#   vec_ref     [L, 8, 128]       packed per-layer vectors (lane-padded):
#                                 0:bqkv 1:bo 2:ln1_g 3:ln1_b 4:b_in 5:b_out 6:ln2_g 7:ln2_b
#   clfw_ref    [H, 128], clfb_ref [1, 128]    classifier (lane-padded to 128)
# Output:
#   o_ref       [B, 128]          lane-dense logits (wrapper slices to NUM_LABELS)

def fused_forward_kernel(ids_ref, mask_ref, word_ref, postype_ref, embln_ref,
                         wqkv_ref, wo_ref, wi_ref, wo2_ref, vec_ref,
                         clfw_ref, clfb_ref, o_ref):
    BS = ids_ref.shape[0]
    B, _, S = mask_ref.shape
    H = wo_ref.shape[1]
    NH = NUM_HEADS
    HD = H // NH
    L = wqkv_ref.shape[0]
    VPAD = word_ref.shape[0]

    # ---- embeddings via one-hot MXU gather (no XLA gather, no HBM round trip) ----
    lane_iota = jax.lax.broadcasted_iota(jnp.int32, (1, VPAD), 1)
    onehot = (ids_ref[...] == lane_iota).astype(jnp.float32)              # [BS, VPAD]
    emb = jnp.dot(onehot, word_ref[...], preferred_element_type=jnp.float32)   # [BS, H]
    emb = emb + jnp.concatenate([postype_ref[0:S, :]] * B, axis=0)        # + pos + type
    x = _layernorm(emb, embln_ref[0:1, :], embln_ref[1:2, :])             # [BS, H]

    # additive attention mask, built once in-kernel, broadcast over queries
    neg3 = (1.0 - mask_ref[...].astype(jnp.float32)) * -1e9               # [B, 1, S]

    for l in range(L):                                                    # static unroll
        vec = vec_ref[l]                                                  # [8, 128]
        bqkv = vec[0:1, 0:3 * H]
        bo = vec[1:2, 0:H]
        g1, be1 = vec[2:3, 0:H], vec[3:4, 0:H]
        b_in = vec[4:5, 0:INTERMEDIATE]
        bo2 = vec[5:6, 0:H]
        g2, be2 = vec[6:7, 0:H], vec[7:8, 0:H]

        # ---- attention: single fused QKV projection (scale pre-folded into Q) ----
        qkv = jnp.dot(x, wqkv_ref[l], preferred_element_type=jnp.float32) + bqkv  # [BS, 3H]

        head_ctx = []
        for h in range(NH):                                               # static, NH=2
            qh = qkv[:, h * HD:(h + 1) * HD].reshape(B, S, HD)
            kh = qkv[:, H + h * HD:H + (h + 1) * HD].reshape(B, S, HD)
            vh = qkv[:, 2 * H + h * HD:2 * H + (h + 1) * HD].reshape(B, S, HD)
            s = jnp.einsum('bqd,bkd->bqk', qh, kh,
                           preferred_element_type=jnp.float32) + neg3     # [B, S, S]
            s = s - jnp.max(s, axis=-1, keepdims=True)
            p = jnp.exp(s)
            p = p * pl.reciprocal(jnp.sum(p, axis=-1, keepdims=True), approx=True)
            ctx = jnp.einsum('bqk,bkd->bqd', p, vh,
                             preferred_element_type=jnp.float32)          # [B, S, HD]
            head_ctx.append(ctx.reshape(BS, HD))
        ctx = jnp.concatenate(head_ctx, axis=-1)                          # [BS, H]

        attn = jnp.dot(ctx, wo_ref[l], preferred_element_type=jnp.float32) + bo
        x = _layernorm(x + attn, g1, be1)

        # ---- feed-forward ----
        # TODO(synk): HF BERT uses exact erf-GELU; tanh-approx GELU kept (matches JAX reference).
        hmid = jax.nn.gelu(
            jnp.dot(x, wi_ref[l], preferred_element_type=jnp.float32) + b_in)
        ffn = jnp.dot(hmid, wo2_ref[l], preferred_element_type=jnp.float32) + bo2
        x = _layernorm(x + ffn, g2, be2)

    # ---- classifier on the FULL activation (no pre-MXU row gather), lane-dense store ----
    logits_all = jnp.dot(x, clfw_ref[...], preferred_element_type=jnp.float32) \
        + clfb_ref[...]                                                   # [BS, 128]
    o_ref[...] = jnp.concatenate(
        [logits_all[b * S:b * S + 1, :] for b in range(B)], axis=0)       # [B, 128]


# ---------------- one-time parameter packing ----------------

def _pad_lanes(v, width=LANE):
    return jnp.pad(v, ((0, 0), (0, width - v.shape[-1])))


def pack_params(params):
    """One-time packing (a real serving path would cache this)."""
    scale = 1.0 / math.sqrt(HEAD_DIM)
    layers = params["layers"]

    wqkv = jnp.stack([jnp.concatenate([lp["wq"] * scale, lp["wk"], lp["wv"]], axis=1)
                      for lp in layers], axis=0)                          # [L, H, 3H]
    wo = jnp.stack([lp["wo"] for lp in layers], axis=0)
    wi = jnp.stack([lp["w_in"] for lp in layers], axis=0)
    wo2 = jnp.stack([lp["w_out"] for lp in layers], axis=0)

    vecs = jnp.stack([
        jnp.concatenate([
            _pad_lanes(jnp.concatenate([lp["bq"] * scale, lp["bk"], lp["bv"]], axis=1)),
            _pad_lanes(lp["bo"]),
            _pad_lanes(lp["ln1_g"]), _pad_lanes(lp["ln1_b"]),
            _pad_lanes(lp["b_in"]),
            _pad_lanes(lp["b_out"]),
            _pad_lanes(lp["ln2_g"]), _pad_lanes(lp["ln2_b"]),
        ], axis=0) for lp in layers], axis=0)                             # [L, 8, 128]

    embln = jnp.concatenate([params["emb_ln_g"], params["emb_ln_b"]], axis=0)   # [2, H]
    word_pad = jnp.pad(params["word_emb"], ((0, VOCAB_PAD - VOCAB), (0, 0)))    # [128, H]
    postype = params["pos_emb"] + params["type_emb"][0:1, :]                    # [MAX_POS, H]
    clf_w = _pad_lanes(params["clf_w"])                                         # [H, 128]
    clf_b = _pad_lanes(params["clf_b"])                                         # [1, 128]

    return dict(word=word_pad, postype=postype, embln=embln,
                wqkv=wqkv, wo=wo, wi=wi, wo2=wo2, vecs=vecs,
                clf_w=clf_w, clf_b=clf_b)


# ---------------- wrapper ----------------

def text_classifier_forward(packed, input_ids, attention_mask):
    B, S = input_ids.shape
    ids = input_ids.reshape(B * S, 1).astype(jnp.int32)
    mask = attention_mask.reshape(B, 1, S).astype(jnp.int32)
    # TODO(synk): at real-BERT scale, add a batch grid axis (v7x 2-TC sharding), bf16 MXU
    # operands on v6e/v7x, and an "arbitrary" layer axis for weight streaming from HBM.
    out = pl.pallas_call(
        fused_forward_kernel,
        out_shape=jax.ShapeDtypeStruct((B, LANE), jnp.float32),
    )(ids, mask, packed["word"], packed["postype"], packed["embln"],
      packed["wqkv"], packed["wo"], packed["wi"], packed["wo2"],
      packed["vecs"], packed["clf_w"], packed["clf_b"])
    return out[:, :NUM_LABELS]


# ---------------- pure-JAX reference (for correctness check) ----------------

def reference_forward(params, input_ids, attention_mask):
    B, S = input_ids.shape
    hp = jax.lax.Precision.HIGHEST
    word = jnp.take(params["word_emb"], input_ids, axis=0)
    emb = word + params["pos_emb"][:S][None, :, :] + params["type_emb"][0][None, None, :]
    x = _layernorm(emb, params["emb_ln_g"], params["emb_ln_b"])             # [B, S, H]

    neg = (1.0 - attention_mask.astype(jnp.float32))[:, None, None, :] * -1e9   # [B,1,1,S]
    scale = 1.0 / math.sqrt(HEAD_DIM)
    for lp in params["layers"]:
        q = jnp.einsum('bsd,dk->bsk', x, lp["wq"], precision=hp) + lp["bq"]
        k = jnp.einsum('bsd,dk->bsk', x, lp["wk"], precision=hp) + lp["bk"]
        v = jnp.einsum('bsd,dk->bsk', x, lp["wv"], precision=hp) + lp["bv"]
        qh = q.reshape(B, S, NUM_HEADS, HEAD_DIM).transpose(0, 2, 1, 3)
        kh = k.reshape(B, S, NUM_HEADS, HEAD_DIM).transpose(0, 2, 1, 3)
        vh = v.reshape(B, S, NUM_HEADS, HEAD_DIM).transpose(0, 2, 1, 3)
        s = jnp.einsum('bhqd,bhkd->bhqk', qh, kh, precision=hp) * scale + neg
        p = jax.nn.softmax(s, axis=-1)
        ctx = jnp.einsum('bhqk,bhkd->bhqd', p, vh, precision=hp)
        ctx = ctx.transpose(0, 2, 1, 3).reshape(B, S, HIDDEN)
        attn = jnp.einsum('bsd,dk->bsk', ctx, lp["wo"], precision=hp) + lp["bo"]
        x = _layernorm(x + attn, lp["ln1_g"], lp["ln1_b"])
        hmid = jax.nn.gelu(jnp.einsum('bsd,dk->bsk', x, lp["w_in"], precision=hp) + lp["b_in"])
        ffn = jnp.einsum('bsd,dk->bsk', hmid, lp["w_out"], precision=hp) + lp["b_out"]
        x = _layernorm(x + ffn, lp["ln2_g"], lp["ln2_b"])
    cls = x[:, 0, :]
    return jnp.dot(cls, params["clf_w"], precision=hp) + params["clf_b"]


# ---------------- deterministic parameter init ----------------

def init_params(key):
    keys = iter(jax.random.split(key, 256))

    def nrm(shape, scale=0.02):
        return (scale * jax.random.normal(next(keys), shape)).astype(jnp.float32)

    def zeros(shape):
        return jnp.zeros(shape, jnp.float32)

    def ones(shape):
        return jnp.ones(shape, jnp.float32)

    params = {
        "word_emb": nrm((VOCAB, HIDDEN)),
        "pos_emb": nrm((MAX_POS, HIDDEN)),
        "type_emb": nrm((2, HIDDEN)),
        "emb_ln_g": ones((1, HIDDEN)),
        "emb_ln_b": zeros((1, HIDDEN)),
        "layers": [],
        "clf_w": nrm((HIDDEN, NUM_LABELS)),
        "clf_b": zeros((1, NUM_LABELS)),
    }
    for _ in range(NUM_LAYERS):
        params["layers"].append({
            "wq": nrm((HIDDEN, HIDDEN)), "bq": zeros((1, HIDDEN)),
            "wk": nrm((HIDDEN, HIDDEN)), "bk": zeros((1, HIDDEN)),
            "wv": nrm((HIDDEN, HIDDEN)), "bv": zeros((1, HIDDEN)),
            "wo": nrm((HIDDEN, HIDDEN)), "bo": zeros((1, HIDDEN)),
            "ln1_g": ones((1, HIDDEN)), "ln1_b": zeros((1, HIDDEN)),
            "w_in": nrm((HIDDEN, INTERMEDIATE)), "b_in": zeros((1, INTERMEDIATE)),
            "w_out": nrm((INTERMEDIATE, HIDDEN)), "b_out": zeros((1, HIDDEN)),
            "ln2_g": ones((1, HIDDEN)), "ln2_b": zeros((1, HIDDEN)),
        })
    return params


if __name__ == "__main__":
    key = jax.random.PRNGKey(0)
    pkey, ikey = jax.random.split(key)
    params = init_params(pkey)
    packed = pack_params(params)   # one-time weight packing

    B, S = 2, 8
    input_ids = jax.random.randint(ikey, (B, S), 0, VOCAB, dtype=jnp.int32)
    attention_mask = jnp.array([[1] * S, [1] * (S - 2) + [0, 0]], dtype=jnp.int32)

    logits = text_classifier_forward(packed, input_ids, attention_mask)
    logits = jax.block_until_ready(logits)
    assert logits.shape == (B, NUM_LABELS), logits.shape
    assert bool(jnp.all(jnp.isfinite(logits)))

    ref = reference_forward(params, input_ids, attention_mask)
    err = float(jnp.max(jnp.abs(logits - ref)))
    assert err < 1e-2, f"max abs diff vs reference: {err}"
    print("KERNEL_OK")
</pallas_src>

<mosaic_0001>
module attributes {stable_mosaic.version = 11 : i64} {
  func.func @fused_forward_kernel(%arg0: memref<16x1xi32, #tpu.memory_space<vmem>>, %arg1: memref<2x1x8xi32, #tpu.memory_space<vmem>>, %arg2: memref<128x32xf32, #tpu.memory_space<vmem>>, %arg3: memref<16x32xf32, #tpu.memory_space<vmem>>, %arg4: memref<2x32xf32, #tpu.memory_space<vmem>>, %arg5: memref<2x32x96xf32, #tpu.memory_space<vmem>>, %arg6: memref<2x32x32xf32, #tpu.memory_space<vmem>>, %arg7: memref<2x32x64xf32, #tpu.memory_space<vmem>>, %arg8: memref<2x64x32xf32, #tpu.memory_space<vmem>>, %arg9: memref<2x8x128xf32, #tpu.memory_space<vmem>>, %arg10: memref<32x128xf32, #tpu.memory_space<vmem>>, %arg11: memref<1x128xf32, #tpu.memory_space<vmem>>, %arg12: memref<2x128xf32, #tpu.memory_space<vmem>>) attributes {dimension_semantics = [], scalar_prefetch = 0 : i64, scratch_operands = 0 : i64, tpu.core_type = #tpu.core_type<tc>} {
    %0 = tpu.iota {dimensions = array<i32: 1>} : vector<1x128xi32>
    %c0 = arith.constant 0 : index
    %c0_0 = arith.constant 0 : index
    %1 = vector.load %arg0[%c0, %c0_0] : memref<16x1xi32, #tpu.memory_space<vmem>>, vector<16x1xi32>
    %2 = vector.broadcast %1 : vector<16x1xi32> to vector<16x128xi32>
    %3 = vector.broadcast %0 : vector<1x128xi32> to vector<16x128xi32>
    %4 = arith.cmpi eq, %2, %3 : vector<16x128xi32>
    %5 = arith.extui %4 : vector<16x128xi1> to vector<16x128xi32>
    %6 = arith.sitofp %5 : vector<16x128xi32> to vector<16x128xf32>
    %c0_1 = arith.constant 0 : index
    %c0_2 = arith.constant 0 : index
    %7 = vector.load %arg2[%c0_1, %c0_2] : memref<128x32xf32, #tpu.memory_space<vmem>>, vector<128x32xf32>
    %cst = arith.constant dense<0.000000e+00> : vector<16x32xf32>
    %8 = tpu.matmul %6, %7, %cst {dimension_numbers = #tpu.dot_dimension_numbers<[1], [0], [0], [1], [0, 0, 1, 1], [], []>} : vector<16x128xf32>, vector<128x32xf32>, vector<16x32xf32> -> vector<16x32xf32>
    %c0_3 = arith.constant 0 : index
    %c0_4 = arith.constant 0 : index
    %9 = vector.load %arg3[%c0_3, %c0_4] : memref<16x32xf32, #tpu.memory_space<vmem>>, vector<8x32xf32>
    %10 = tpu.concatenate %9, %9 in 0 : vector<8x32xf32>, vector<8x32xf32> -> vector<16x32xf32>
    %11 = arith.addf %8, %10 : vector<16x32xf32>
    %c0_5 = arith.constant 0 : index
    %c0_6 = arith.constant 0 : index
    %12 = vector.load %arg4[%c0_5, %c0_6] : memref<2x32xf32, #tpu.memory_space<vmem>>, vector<1x32xf32>
    %c1 = arith.constant 1 : index
    %c0_7 = arith.constant 0 : index
    %13 = vector.load %arg4[%c1, %c0_7] : memref<2x32xf32, #tpu.memory_space<vmem>>, vector<1x32xf32>
    %cst_8 = arith.constant dense<0.000000e+00> : vector<16xf32>
    %14 = vector.multi_reduction <add>, %11, %cst_8 [1] : vector<16x32xf32> to vector<16xf32>
    %15 = vector.shape_cast %14 : vector<16xf32> to vector<16x1xf32>
    %cst_9 = arith.constant 3.200000e+01 : f32
    %16 = vector.broadcast %cst_9 : f32 to vector<16x1xf32>
    %17 = arith.divf %15, %16 : vector<16x1xf32>
    %18 = vector.broadcast %17 : vector<16x1xf32> to vector<16x32xf32>
    %19 = arith.subf %11, %18 : vector<16x32xf32>
    %20 = arith.mulf %19, %19 : vector<16x32xf32>
    %cst_10 = arith.constant dense<0.000000e+00> : vector<16xf32>
    %21 = vector.multi_reduction <add>, %20, %cst_10 [1] : vector<16x32xf32> to vector<16xf32>
    %22 = vector.shape_cast %21 : vector<16xf32> to vector<16x1xf32>
    %cst_11 = arith.constant 3.200000e+01 : f32
    %23 = vector.broadcast %cst_11 : f32 to vector<16x1xf32>
    %24 = arith.divf %22, %23 : vector<16x1xf32>
    %25 = vector.broadcast %17 : vector<16x1xf32> to vector<16x32xf32>
    %26 = arith.subf %11, %25 : vector<16x32xf32>
    %cst_12 = arith.constant 9.99999996E-13 : f32
    %27 = vector.broadcast %cst_12 : f32 to vector<16x1xf32>
    %28 = arith.addf %24, %27 : vector<16x1xf32>
    %29 = math.rsqrt %28 : vector<16x1xf32>
    %30 = vector.broadcast %29 : vector<16x1xf32> to vector<16x32xf32>
    %31 = arith.mulf %26, %30 : vector<16x32xf32>
    %32 = vector.broadcast %12 : vector<1x32xf32> to vector<16x32xf32>
    %33 = arith.mulf %31, %32 : vector<16x32xf32>
    %34 = vector.broadcast %13 : vector<1x32xf32> to vector<16x32xf32>
    %35 = arith.addf %33, %34 : vector<16x32xf32>
    %c0_13 = arith.constant 0 : index
    %c0_14 = arith.constant 0 : index
    %c0_15 = arith.constant 0 : index
    %36 = vector.load %arg1[%c0_13, %c0_14, %c0_15] : memref<2x1x8xi32, #tpu.memory_space<vmem>>, vector<2x1x8xi32>
    %37 = arith.sitofp %36 : vector<2x1x8xi32> to vector<2x1x8xf32>
    %cst_16 = arith.constant 1.000000e+00 : f32
    %38 = vector.broadcast %cst_16 : f32 to vector<2x1x8xf32>
    %39 = arith.subf %38, %37 : vector<2x1x8xf32>
    %cst_17 = arith.constant -1.000000e+09 : f32
    %40 = vector.broadcast %cst_17 : f32 to vector<2x1x8xf32>
    %41 = arith.mulf %39, %40 : vector<2x1x8xf32>
    %c0_18 = arith.constant 0 : index
    %c0_19 = arith.constant 0 : index
    %c0_20 = arith.constant 0 : index
    %42 = vector.load %arg9[%c0_18, %c0_19, %c0_20] : memref<2x8x128xf32, #tpu.memory_space<vmem>>, vector<1x8x128xf32>
    %43 = vector.shape_cast %42 : vector<1x8x128xf32> to vector<8x128xf32>
    %44 = vector.extract_strided_slice %43 {offsets = [0, 0], sizes = [1, 96], strides = [1, 1]} : vector<8x128xf32> to vector<1x96xf32>
    %45 = vector.extract_strided_slice %43 {offsets = [1, 0], sizes = [1, 32], strides = [1, 1]} : vector<8x128xf32> to vector<1x32xf32>
    %46 = vector.extract_strided_slice %43 {offsets = [2, 0], sizes = [1, 32], strides = [1, 1]} : vector<8x128xf32> to vector<1x32xf32>
    %47 = vector.extract_strided_slice %43 {offsets = [3, 0], sizes = [1, 32], strides = [1, 1]} : vector<8x128xf32> to vector<1x32xf32>
    %48 = vector.extract_strided_slice %43 {offsets = [4, 0], sizes = [1, 64], strides = [1, 1]} : vector<8x128xf32> to vector<1x64xf32>
    %49 = vector.extract_strided_slice %43 {offsets = [5, 0], sizes = [1, 32], strides = [1, 1]} : vector<8x128xf32> to vector<1x32xf32>
    %50 = vector.extract_strided_slice %43 {offsets = [6, 0], sizes = [1, 32], strides = [1, 1]} : vector<8x128xf32> to vector<1x32xf32>
    %51 = vector.extract_strided_slice %43 {offsets = [7, 0], sizes = [1, 32], strides = [1, 1]} : vector<8x128xf32> to vector<1x32xf32>
    %c0_21 = arith.constant 0 : index
    %c0_22 = arith.constant 0 : index
    %c0_23 = arith.constant 0 : index
    %52 = vector.load %arg5[%c0_21, %c0_22, %c0_23] : memref<2x32x96xf32, #tpu.memory_space<vmem>>, vector<1x32x96xf32>
    %53 = vector.shape_cast %52 : vector<1x32x96xf32> to vector<32x96xf32>
    %cst_24 = arith.constant dense<0.000000e+00> : vector<16x96xf32>
    %54 = tpu.matmul %35, %53, %cst_24 {dimension_numbers = #tpu.dot_dimension_numbers<[1], [0], [0], [1], [0, 0, 1, 1], [], []>} : vector<16x32xf32>, vector<32x96xf32>, vector<16x96xf32> -> vector<16x96xf32>
    %55 = vector.broadcast %44 : vector<1x96xf32> to vector<16x96xf32>
    %56 = arith.addf %54, %55 : vector<16x96xf32>
    %57 = vector.extract_strided_slice %56 {offsets = [0, 0], sizes = [16, 16], strides = [1, 1]} : vector<16x96xf32> to vector<16x16xf32>
    %58 = vector.shape_cast %57 : vector<16x16xf32> to vector<2x8x16xf32>
    %59 = vector.extract_strided_slice %56 {offsets = [0, 32], sizes = [16, 16], strides = [1, 1]} : vector<16x96xf32> to vector<16x16xf32>
    %60 = vector.shape_cast %59 : vector<16x16xf32> to vector<2x8x16xf32>
    %61 = vector.extract_strided_slice %56 {offsets = [0, 64], sizes = [16, 16], strides = [1, 1]} : vector<16x96xf32> to vector<16x16xf32>
    %62 = vector.shape_cast %61 : vector<16x16xf32> to vector<2x8x16xf32>
    "tpu.trace_start"() <{level = 10 : i32, message = "bqd,bkd->bqk"}> : () -> ()
    %cst_25 = arith.constant dense<0.000000e+00> : vector<2x8x8xf32>
    %63 = tpu.matmul %58, %60, %cst_25 {dimension_numbers = #tpu.dot_dimension_numbers<[2], [2], [1], [1], [0, 0, 0, 1, 1, 1], [0], [0]>} : vector<2x8x16xf32>, vector<2x8x16xf32>, vector<2x8x8xf32> -> vector<2x8x8xf32>
    "tpu.trace_stop"() : () -> ()
    %64 = vector.broadcast %41 : vector<2x1x8xf32> to vector<2x8x8xf32>
    %65 = arith.addf %63, %64 : vector<2x8x8xf32>
    %cst_26 = arith.constant dense<0xFF800000> : vector<2x8xf32>
    %66 = vector.multi_reduction <maximumf>, %65, %cst_26 [2] : vector<2x8x8xf32> to vector<2x8xf32>
    %67 = vector.shape_cast %66 : vector<2x8xf32> to vector<2x8x1xf32>
    %68 = vector.broadcast %67 : vector<2x8x1xf32> to vector<2x8x8xf32>
    %69 = arith.subf %65, %68 : vector<2x8x8xf32>
    %70 = math.exp %69 : vector<2x8x8xf32>
    %cst_27 = arith.constant dense<0.000000e+00> : vector<2x8xf32>
    %71 = vector.multi_reduction <add>, %70, %cst_27 [2] : vector<2x8x8xf32> to vector<2x8xf32>
    %72 = vector.shape_cast %71 : vector<2x8xf32> to vector<2x8x1xf32>
    %73 = tpu.reciprocal %72 {approx = true} : vector<2x8x1xf32> -> vector<2x8x1xf32>
    %74 = vector.broadcast %73 : vector<2x8x1xf32> to vector<2x8x8xf32>
    %75 = arith.mulf %70, %74 : vector<2x8x8xf32>
    "tpu.trace_start"() <{level = 10 : i32, message = "bqk,bkd->bqd"}> : () -> ()
    %cst_28 = arith.constant dense<0.000000e+00> : vector<2x8x16xf32>
    %76 = tpu.matmul %75, %62, %cst_28 {dimension_numbers = #tpu.dot_dimension_numbers<[2], [1], [1], [2], [0, 0, 0, 1, 1, 2], [0], [0]>} : vector<2x8x8xf32>, vector<2x8x16xf32>, vector<2x8x16xf32> -> vector<2x8x16xf32>
    "tpu.trace_stop"() : () -> ()
    %77 = vector.shape_cast %76 : vector<2x8x16xf32> to vector<16x16xf32>
    %78 = vector.extract_strided_slice %56 {offsets = [0, 16], sizes = [16, 16], strides = [1, 1]} : vector<16x96xf32> to vector<16x16xf32>
    %79 = vector.shape_cast %78 : vector<16x16xf32> to vector<2x8x16xf32>
    %80 = vector.extract_strided_slice %56 {offsets = [0, 48], sizes = [16, 16], strides = [1, 1]} : vector<16x96xf32> to vector<16x16xf32>
    %81 = vector.shape_cast %80 : vector<16x16xf32> to vector<2x8x16xf32>
    %82 = vector.extract_strided_slice %56 {offsets = [0, 80], sizes = [16, 16], strides = [1, 1]} : vector<16x96xf32> to vector<16x16xf32>
    %83 = vector.shape_cast %82 : vector<16x16xf32> to vector<2x8x16xf32>
    "tpu.trace_start"() <{level = 10 : i32, message = "bqd,bkd->bqk"}> : () -> ()
    %cst_29 = arith.constant dense<0.000000e+00> : vector<2x8x8xf32>
    %84 = tpu.matmul %79, %81, %cst_29 {dimension_numbers = #tpu.dot_dimension_numbers<[2], [2], [1], [1], [0, 0, 0, 1, 1, 1], [0], [0]>} : vector<2x8x16xf32>, vector<2x8x16xf32>, vector<2x8x8xf32> -> vector<2x8x8xf32>
    "tpu.trace_stop"() : () -> ()
    %85 = vector.broadcast %41 : vector<2x1x8xf32> to vector<2x8x8xf32>
    %86 = arith.addf %84, %85 : vector<2x8x8xf32>
    %cst_30 = arith.constant dense<0xFF800000> : vector<2x8xf32>
    %87 = vector.multi_reduction <maximumf>, %86, %cst_30 [2] : vector<2x8x8xf32> to vector<2x8xf32>
    %88 = vector.shape_cast %87 : vector<2x8xf32> to vector<2x8x1xf32>
    %89 = vector.broadcast %88 : vector<2x8x1xf32> to vector<2x8x8xf32>
    %90 = arith.subf %86, %89 : vector<2x8x8xf32>
    %91 = math.exp %90 : vector<2x8x8xf32>
    %cst_31 = arith.constant dense<0.000000e+00> : vector<2x8xf32>
    %92 = vector.multi_reduction <add>, %91, %cst_31 [2] : vector<2x8x8xf32> to vector<2x8xf32>
    %93 = vector.shape_cast %92 : vector<2x8xf32> to vector<2x8x1xf32>
    %94 = tpu.reciprocal %93 {approx = true} : vector<2x8x1xf32> -> vector<2x8x1xf32>
    %95 = vector.broadcast %94 : vector<2x8x1xf32> to vector<2x8x8xf32>
    %96 = arith.mulf %91, %95 : vector<2x8x8xf32>
    "tpu.trace_start"() <{level = 10 : i32, message = "bqk,bkd->bqd"}> : () -> ()
    %cst_32 = arith.constant dense<0.000000e+00> : vector<2x8x16xf32>
    %97 = tpu.matmul %96, %83, %cst_32 {dimension_numbers = #tpu.dot_dimension_numbers<[2], [1], [1], [2], [0, 0, 0, 1, 1, 2], [0], [0]>} : vector<2x8x8xf32>, vector<2x8x16xf32>, vector<2x8x16xf32> -> vector<2x8x16xf32>
    "tpu.trace_stop"() : () -> ()
    %98 = vector.shape_cast %97 : vector<2x8x16xf32> to vector<16x16xf32>
    %99 = tpu.concatenate %77, %98 in 1 : vector<16x16xf32>, vector<16x16xf32> -> vector<16x32xf32>
    %c0_33 = arith.constant 0 : index
    %c0_34 = arith.constant 0 : index
    %c0_35 = arith.constant 0 : index
    %100 = vector.load %arg6[%c0_33, %c0_34, %c0_35] : memref<2x32x32xf32, #tpu.memory_space<vmem>>, vector<1x32x32xf32>
    %101 = vector.shape_cast %100 : vector<1x32x32xf32> to vector<32x32xf32>
    %cst_36 = arith.constant dense<0.000000e+00> : vector<16x32xf32>
    %102 = tpu.matmul %99, %101, %cst_36 {dimension_numbers = #tpu.dot_dimension_numbers<[1], [0], [0], [1], [0, 0, 1, 1], [], []>} : vector<16x32xf32>, vector<32x32xf32>, vector<16x32xf32> -> vector<16x32xf32>
    %103 = vector.broadcast %45 : vector<1x32xf32> to vector<16x32xf32>
    %104 = arith.addf %102, %103 : vector<16x32xf32>
    %105 = arith.addf %35, %104 : vector<16x32xf32>
    %cst_37 = arith.constant dense<0.000000e+00> : vector<16xf32>
    %106 = vector.multi_reduction <add>, %105, %cst_37 [1] : vector<16x32xf32> to vector<16xf32>
    %107 = vector.shape_cast %106 : vector<16xf32> to vector<16x1xf32>
    %cst_38 = arith.constant 3.200000e+01 : f32
    %108 = vector.broadcast %cst_38 : f32 to vector<16x1xf32>
    %109 = arith.divf %107, %108 : vector<16x1xf32>
    %110 = vector.broadcast %109 : vector<16x1xf32> to vector<16x32xf32>
    %111 = arith.subf %105, %110 : vector<16x32xf32>
    %112 = arith.mulf %111, %111 : vector<16x32xf32>
    %cst_39 = arith.constant dense<0.000000e+00> : vector<16xf32>
    %113 = vector.multi_reduction <add>, %112, %cst_39 [1] : vector<16x32xf32> to vector<16xf32>
    %114 = vector.shape_cast %113 : vector<16xf32> to vector<16x1xf32>
    %cst_40 = arith.constant 3.200000e+01 : f32
    %115 = vector.broadcast %cst_40 : f32 to vector<16x1xf32>
    %116 = arith.divf %114, %115 : vector<16x1xf32>
    %117 = vector.broadcast %109 : vector<16x1xf32> to vector<16x32xf32>
    %118 = arith.subf %105, %117 : vector<16x32xf32>
    %cst_41 = arith.constant 9.99999996E-13 : f32
    %119 = vector.broadcast %cst_41 : f32 to vector<16x1xf32>
    %120 = arith.addf %116, %119 : vector<16x1xf32>
    %121 = math.rsqrt %120 : vector<16x1xf32>
    %122 = vector.broadcast %121 : vector<16x1xf32> to vector<16x32xf32>
    %123 = arith.mulf %118, %122 : vector<16x32xf32>
    %124 = vector.broadcast %46 : vector<1x32xf32> to vector<16x32xf32>
    %125 = arith.mulf %123, %124 : vector<16x32xf32>
    %126 = vector.broadcast %47 : vector<1x32xf32> to vector<16x32xf32>
    %127 = arith.addf %125, %126 : vector<16x32xf32>
    %c0_42 = arith.constant 0 : index
    %c0_43 = arith.constant 0 : index
    %c0_44 = arith.constant 0 : index
    %128 = vector.load %arg7[%c0_42, %c0_43, %c0_44] : memref<2x32x64xf32, #tpu.memory_space<vmem>>, vector<1x32x64xf32>
    %129 = vector.shape_cast %128 : vector<1x32x64xf32> to vector<32x64xf32>
    %cst_45 = arith.constant dense<0.000000e+00> : vector<16x64xf32>
    %130 = tpu.matmul %127, %129, %cst_45 {dimension_numbers = #tpu.dot_dimension_numbers<[1], [0], [0], [1], [0, 0, 1, 1], [], []>} : vector<16x32xf32>, vector<32x64xf32>, vector<16x64xf32> -> vector<16x64xf32>
    %131 = vector.broadcast %48 : vector<1x64xf32> to vector<16x64xf32>
    %132 = arith.addf %130, %131 : vector<16x64xf32>
    %133 = arith.mulf %132, %132 : vector<16x64xf32>
    %134 = arith.mulf %132, %133 : vector<16x64xf32>
    %cst_46 = arith.constant 4.471500e-02 : f32
    %135 = vector.broadcast %cst_46 : f32 to vector<16x64xf32>
    %136 = arith.mulf %135, %134 : vector<16x64xf32>
    %137 = arith.addf %132, %136 : vector<16x64xf32>
    %cst_47 = arith.constant 0.797884583 : f32
    %138 = vector.broadcast %cst_47 : f32 to vector<16x64xf32>
    %139 = arith.mulf %138, %137 : vector<16x64xf32>
    %140 = math.tanh %139 : vector<16x64xf32>
    %cst_48 = arith.constant 1.000000e+00 : f32
    %141 = vector.broadcast %cst_48 : f32 to vector<16x64xf32>
    %142 = arith.addf %141, %140 : vector<16x64xf32>
    %cst_49 = arith.constant 5.000000e-01 : f32
    %143 = vector.broadcast %cst_49 : f32 to vector<16x64xf32>
    %144 = arith.mulf %143, %142 : vector<16x64xf32>
    %145 = arith.mulf %132, %144 : vector<16x64xf32>
    %c0_50 = arith.constant 0 : index
    %c0_51 = arith.constant 0 : index
    %c0_52 = arith.constant 0 : index
    %146 = vector.load %arg8[%c0_50, %c0_51, %c0_52] : memref<2x64x32xf32, #tpu.memory_space<vmem>>, vector<1x64x32xf32>
    %147 = vector.shape_cast %146 : vector<1x64x32xf32> to vector<64x32xf32>
    %cst_53 = arith.constant dense<0.000000e+00> : vector<16x32xf32>
    %148 = tpu.matmul %145, %147, %cst_53 {dimension_numbers = #tpu.dot_dimension_numbers<[1], [0], [0], [1], [0, 0, 1, 1], [], []>} : vector<16x64xf32>, vector<64x32xf32>, vector<16x32xf32> -> vector<16x32xf32>
    %149 = vector.broadcast %49 : vector<1x32xf32> to vector<16x32xf32>
    %150 = arith.addf %148, %149 : vector<16x32xf32>
    %151 = arith.addf %127, %150 : vector<16x32xf32>
    %cst_54 = arith.constant dense<0.000000e+00> : vector<16xf32>
    %152 = vector.multi_reduction <add>, %151, %cst_54 [1] : vector<16x32xf32> to vector<16xf32>
    %153 = vector.shape_cast %152 : vector<16xf32> to vector<16x1xf32>
    %cst_55 = arith.constant 3.200000e+01 : f32
    %154 = vector.broadcast %cst_55 : f32 to vector<16x1xf32>
    %155 = arith.divf %153, %154 : vector<16x1xf32>
    %156 = vector.broadcast %155 : vector<16x1xf32> to vector<16x32xf32>
    %157 = arith.subf %151, %156 : vector<16x32xf32>
    %158 = arith.mulf %157, %157 : vector<16x32xf32>
    %cst_56 = arith.constant dense<0.000000e+00> : vector<16xf32>
    %159 = vector.multi_reduction <add>, %158, %cst_56 [1] : vector<16x32xf32> to vector<16xf32>
    %160 = vector.shape_cast %159 : vector<16xf32> to vector<16x1xf32>
    %cst_57 = arith.constant 3.200000e+01 : f32
    %161 = vector.broadcast %cst_57 : f32 to vector<16x1xf32>
    %162 = arith.divf %160, %161 : vector<16x1xf32>
    %163 = vector.broadcast %155 : vector<16x1xf32> to vector<16x32xf32>
    %164 = arith.subf %151, %163 : vector<16x32xf32>
    %cst_58 = arith.constant 9.99999996E-13 : f32
    %165 = vector.broadcast %cst_58 : f32 to vector<16x1xf32>
    %166 = arith.addf %162, %165 : vector<16x1xf32>
    %167 = math.rsqrt %166 : vector<16x1xf32>
    %168 = vector.broadcast %167 : vector<16x1xf32> to vector<16x32xf32>
    %169 = arith.mulf %164, %168 : vector<16x32xf32>
    %170 = vector.broadcast %50 : vector<1x32xf32> to vector<16x32xf32>
    %171 = arith.mulf %169, %170 : vector<16x32xf32>
    %172 = vector.broadcast %51 : vector<1x32xf32> to vector<16x32xf32>
    %173 = arith.addf %171, %172 : vector<16x32xf32>
    %c1_59 = arith.constant 1 : index
    %c0_60 = arith.constant 0 : index
    %c0_61 = arith.constant 0 : index
    %174 = vector.load %arg9[%c1_59, %c0_60, %c0_61] : memref<2x8x128xf32, #tpu.memory_space<vmem>>, vector<1x8x128xf32>
    %175 = vector.shape_cast %174 : vector<1x8x128xf32> to vector<8x128xf32>
    %176 = vector.extract_strided_slice %175 {offsets = [0, 0], sizes = [1, 96], strides = [1, 1]} : vector<8x128xf32> to vector<1x96xf32>
    %177 = vector.extract_strided_slice %175 {offsets = [1, 0], sizes = [1, 32], strides = [1, 1]} : vector<8x128xf32> to vector<1x32xf32>
    %178 = vector.extract_strided_slice %175 {offsets = [2, 0], sizes = [1, 32], strides = [1, 1]} : vector<8x128xf32> to vector<1x32xf32>
    %179 = vector.extract_strided_slice %175 {offsets = [3, 0], sizes = [1, 32], strides = [1, 1]} : vector<8x128xf32> to vector<1x32xf32>
    %180 = vector.extract_strided_slice %175 {offsets = [4, 0], sizes = [1, 64], strides = [1, 1]} : vector<8x128xf32> to vector<1x64xf32>
    %181 = vector.extract_strided_slice %175 {offsets = [5, 0], sizes = [1, 32], strides = [1, 1]} : vector<8x128xf32> to vector<1x32xf32>
    %182 = vector.extract_strided_slice %175 {offsets = [6, 0], sizes = [1, 32], strides = [1, 1]} : vector<8x128xf32> to vector<1x32xf32>
    %183 = vector.extract_strided_slice %175 {offsets = [7, 0], sizes = [1, 32], strides = [1, 1]} : vector<8x128xf32> to vector<1x32xf32>
    %c1_62 = arith.constant 1 : index
    %c0_63 = arith.constant 0 : index
    %c0_64 = arith.constant 0 : index
    %184 = vector.load %arg5[%c1_62, %c0_63, %c0_64] : memref<2x32x96xf32, #tpu.memory_space<vmem>>, vector<1x32x96xf32>
    %185 = vector.shape_cast %184 : vector<1x32x96xf32> to vector<32x96xf32>
    %cst_65 = arith.constant dense<0.000000e+00> : vector<16x96xf32>
    %186 = tpu.matmul %173, %185, %cst_65 {dimension_numbers = #tpu.dot_dimension_numbers<[1], [0], [0], [1], [0, 0, 1, 1], [], []>} : vector<16x32xf32>, vector<32x96xf32>, vector<16x96xf32> -> vector<16x96xf32>
    %187 = vector.broadcast %176 : vector<1x96xf32> to vector<16x96xf32>
    %188 = arith.addf %186, %187 : vector<16x96xf32>
    %189 = vector.extract_strided_slice %188 {offsets = [0, 0], sizes = [16, 16], strides = [1, 1]} : vector<16x96xf32> to vector<16x16xf32>
    %190 = vector.shape_cast %189 : vector<16x16xf32> to vector<2x8x16xf32>
    %191 = vector.extract_strided_slice %188 {offsets = [0, 32], sizes = [16, 16], strides = [1, 1]} : vector<16x96xf32> to vector<16x16xf32>
    %192 = vector.shape_cast %191 : vector<16x16xf32> to vector<2x8x16xf32>
    %193 = vector.extract_strided_slice %188 {offsets = [0, 64], sizes = [16, 16], strides = [1, 1]} : vector<16x96xf32> to vector<16x16xf32>
    %194 = vector.shape_cast %193 : vector<16x16xf32> to vector<2x8x16xf32>
    "tpu.trace_start"() <{level = 10 : i32, message = "bqd,bkd->bqk"}> : () -> ()
    %cst_66 = arith.constant dense<0.000000e+00> : vector<2x8x8xf32>
    %195 = tpu.matmul %190, %192, %cst_66 {dimension_numbers = #tpu.dot_dimension_numbers<[2], [2], [1], [1], [0, 0, 0, 1, 1, 1], [0], [0]>} : vector<2x8x16xf32>, vector<2x8x16xf32>, vector<2x8x8xf32> -> vector<2x8x8xf32>
    "tpu.trace_stop"() : () -> ()
    %196 = vector.broadcast %41 : vector<2x1x8xf32> to vector<2x8x8xf32>
    %197 = arith.addf %195, %196 : vector<2x8x8xf32>
    %cst_67 = arith.constant dense<0xFF800000> : vector<2x8xf32>
    %198 = vector.multi_reduction <maximumf>, %197, %cst_67 [2] : vector<2x8x8xf32> to vector<2x8xf32>
    %199 = vector.shape_cast %198 : vector<2x8xf32> to vector<2x8x1xf32>
    %200 = vector.broadcast %199 : vector<2x8x1xf32> to vector<2x8x8xf32>
    %201 = arith.subf %197, %200 : vector<2x8x8xf32>
    %202 = math.exp %201 : vector<2x8x8xf32>
    %cst_68 = arith.constant dense<0.000000e+00> : vector<2x8xf32>
    %203 = vector.multi_reduction <add>, %202, %cst_68 [2] : vector<2x8x8xf32> to vector<2x8xf32>
    %204 = vector.shape_cast %203 : vector<2x8xf32> to vector<2x8x1xf32>
    %205 = tpu.reciprocal %204 {approx = true} : vector<2x8x1xf32> -> vector<2x8x1xf32>
    %206 = vector.broadcast %205 : vector<2x8x1xf32> to vector<2x8x8xf32>
    %207 = arith.mulf %202, %206 : vector<2x8x8xf32>
    "tpu.trace_start"() <{level = 10 : i32, message = "bqk,bkd->bqd"}> : () -> ()
    %cst_69 = arith.constant dense<0.000000e+00> : vector<2x8x16xf32>
    %208 = tpu.matmul %207, %194, %cst_69 {dimension_numbers = #tpu.dot_dimension_numbers<[2], [1], [1], [2], [0, 0, 0, 1, 1, 2], [0], [0]>} : vector<2x8x8xf32>, vector<2x8x16xf32>, vector<2x8x16xf32> -> vector<2x8x16xf32>
    "tpu.trace_stop"() : () -> ()
    %209 = vector.shape_cast %208 : vector<2x8x16xf32> to vector<16x16xf32>
    %210 = vector.extract_strided_slice %188 {offsets = [0, 16], sizes = [16, 16], strides = [1, 1]} : vector<16x96xf32> to vector<16x16xf32>
    %211 = vector.shape_cast %210 : vector<16x16xf32> to vector<2x8x16xf32>
    %212 = vector.extract_strided_slice %188 {offsets = [0, 48], sizes = [16, 16], strides = [1, 1]} : vector<16x96xf32> to vector<16x16xf32>
    %213 = vector.shape_cast %212 : vector<16x16xf32> to vector<2x8x16xf32>
    %214 = vector.extract_strided_slice %188 {offsets = [0, 80], sizes = [16, 16], strides = [1, 1]} : vector<16x96xf32> to vector<16x16xf32>
    %215 = vector.shape_cast %214 : vector<16x16xf32> to vector<2x8x16xf32>
    "tpu.trace_start"() <{level = 10 : i32, message = "bqd,bkd->bqk"}> : () -> ()
    %cst_70 = arith.constant dense<0.000000e+00> : vector<2x8x8xf32>
    %216 = tpu.matmul %211, %213, %cst_70 {dimension_numbers = #tpu.dot_dimension_numbers<[2], [2], [1], [1], [0, 0, 0, 1, 1, 1], [0], [0]>} : vector<2x8x16xf32>, vector<2x8x16xf32>, vector<2x8x8xf32> -> vector<2x8x8xf32>
    "tpu.trace_stop"() : () -> ()
    %217 = vector.broadcast %41 : vector<2x1x8xf32> to vector<2x8x8xf32>
    %218 = arith.addf %216, %217 : vector<2x8x8xf32>
    %cst_71 = arith.constant dense<0xFF800000> : vector<2x8xf32>
    %219 = vector.multi_reduction <maximumf>, %218, %cst_71 [2] : vector<2x8x8xf32> to vector<2x8xf32>
    %220 = vector.shape_cast %219 : vector<2x8xf32> to vector<2x8x1xf32>
    %221 = vector.broadcast %220 : vector<2x8x1xf32> to vector<2x8x8xf32>
    %222 = arith.subf %218, %221 : vector<2x8x8xf32>
    %223 = math.exp %222 : vector<2x8x8xf32>
    %cst_72 = arith.constant dense<0.000000e+00> : vector<2x8xf32>
    %224 = vector.multi_reduction <add>, %223, %cst_72 [2] : vector<2x8x8xf32> to vector<2x8xf32>
    %225 = vector.shape_cast %224 : vector<2x8xf32> to vector<2x8x1xf32>
    %226 = tpu.reciprocal %225 {approx = true} : vector<2x8x1xf32> -> vector<2x8x1xf32>
    %227 = vector.broadcast %226 : vector<2x8x1xf32> to vector<2x8x8xf32>
    %228 = arith.mulf %223, %227 : vector<2x8x8xf32>
    "tpu.trace_start"() <{level = 10 : i32, message = "bqk,bkd->bqd"}> : () -> ()
    %cst_73 = arith.constant dense<0.000000e+00> : vector<2x8x16xf32>
    %229 = tpu.matmul %228, %215, %cst_73 {dimension_numbers = #tpu.dot_dimension_numbers<[2], [1], [1], [2], [0, 0, 0, 1, 1, 2], [0], [0]>} : vector<2x8x8xf32>, vector<2x8x16xf32>, vector<2x8x16xf32> -> vector<2x8x16xf32>
    "tpu.trace_stop"() : () -> ()
    %230 = vector.shape_cast %229 : vector<2x8x16xf32> to vector<16x16xf32>
    %231 = tpu.concatenate %209, %230 in 1 : vector<16x16xf32>, vector<16x16xf32> -> vector<16x32xf32>
    %c1_74 = arith.constant 1 : index
    %c0_75 = arith.constant 0 : index
    %c0_76 = arith.constant 0 : index
    %232 = vector.load %arg6[%c1_74, %c0_75, %c0_76] : memref<2x32x32xf32, #tpu.memory_space<vmem>>, vector<1x32x32xf32>
    %233 = vector.shape_cast %232 : vector<1x32x32xf32> to vector<32x32xf32>
    %cst_77 = arith.constant dense<0.000000e+00> : vector<16x32xf32>
    %234 = tpu.matmul %231, %233, %cst_77 {dimension_numbers = #tpu.dot_dimension_numbers<[1], [0], [0], [1], [0, 0, 1, 1], [], []>} : vector<16x32xf32>, vector<32x32xf32>, vector<16x32xf32> -> vector<16x32xf32>
    %235 = vector.broadcast %177 : vector<1x32xf32> to vector<16x32xf32>
    %236 = arith.addf %234, %235 : vector<16x32xf32>
    %237 = arith.addf %173, %236 : vector<16x32xf32>
    %cst_78 = arith.constant dense<0.000000e+00> : vector<16xf32>
    %238 = vector.multi_reduction <add>, %237, %cst_78 [1] : vector<16x32xf32> to vector<16xf32>
    %239 = vector.shape_cast %238 : vector<16xf32> to vector<16x1xf32>
    %cst_79 = arith.constant 3.200000e+01 : f32
    %240 = vector.broadcast %cst_79 : f32 to vector<16x1xf32>
    %241 = arith.divf %239, %240 : vector<16x1xf32>
    %242 = vector.broadcast %241 : vector<16x1xf32> to vector<16x32xf32>
    %243 = arith.subf %237, %242 : vector<16x32xf32>
    %244 = arith.mulf %243, %243 : vector<16x32xf32>
    %cst_80 = arith.constant dense<0.000000e+00> : vector<16xf32>
    %245 = vector.multi_reduction <add>, %244, %cst_80 [1] : vector<16x32xf32> to vector<16xf32>
    %246 = vector.shape_cast %245 : vector<16xf32> to vector<16x1xf32>
    %cst_81 = arith.constant 3.200000e+01 : f32
    %247 = vector.broadcast %cst_81 : f32 to vector<16x1xf32>
    %248 = arith.divf %246, %247 : vector<16x1xf32>
    %249 = vector.broadcast %241 : vector<16x1xf32> to vector<16x32xf32>
    %250 = arith.subf %237, %249 : vector<16x32xf32>
    %cst_82 = arith.constant 9.99999996E-13 : f32
    %251 = vector.broadcast %cst_82 : f32 to vector<16x1xf32>
    %252 = arith.addf %248, %251 : vector<16x1xf32>
    %253 = math.rsqrt %252 : vector<16x1xf32>
    %254 = vector.broadcast %253 : vector<16x1xf32> to vector<16x32xf32>
    %255 = arith.mulf %250, %254 : vector<16x32xf32>
    %256 = vector.broadcast %178 : vector<1x32xf32> to vector<16x32xf32>
    %257 = arith.mulf %255, %256 : vector<16x32xf32>
    %258 = vector.broadcast %179 : vector<1x32xf32> to vector<16x32xf32>
    %259 = arith.addf %257, %258 : vector<16x32xf32>
    %c1_83 = arith.constant 1 : index
    %c0_84 = arith.constant 0 : index
    %c0_85 = arith.constant 0 : index
    %260 = vector.load %arg7[%c1_83, %c0_84, %c0_85] : memref<2x32x64xf32, #tpu.memory_space<vmem>>, vector<1x32x64xf32>
    %261 = vector.shape_cast %260 : vector<1x32x64xf32> to vector<32x64xf32>
    %cst_86 = arith.constant dense<0.000000e+00> : vector<16x64xf32>
    %262 = tpu.matmul %259, %261, %cst_86 {dimension_numbers = #tpu.dot_dimension_numbers<[1], [0], [0], [1], [0, 0, 1, 1], [], []>} : vector<16x32xf32>, vector<32x64xf32>, vector<16x64xf32> -> vector<16x64xf32>
    %263 = vector.broadcast %180 : vector<1x64xf32> to vector<16x64xf32>
    %264 = arith.addf %262, %263 : vector<16x64xf32>
    %265 = arith.mulf %264, %264 : vector<16x64xf32>
    %266 = arith.mulf %264, %265 : vector<16x64xf32>
    %cst_87 = arith.constant 4.471500e-02 : f32
    %267 = vector.broadcast %cst_87 : f32 to vector<16x64xf32>
    %268 = arith.mulf %267, %266 : vector<16x64xf32>
    %269 = arith.addf %264, %268 : vector<16x64xf32>
    %cst_88 = arith.constant 0.797884583 : f32
    %270 = vector.broadcast %cst_88 : f32 to vector<16x64xf32>
    %271 = arith.mulf %270, %269 : vector<16x64xf32>
    %272 = math.tanh %271 : vector<16x64xf32>
    %cst_89 = arith.constant 1.000000e+00 : f32
    %273 = vector.broadcast %cst_89 : f32 to vector<16x64xf32>
    %274 = arith.addf %273, %272 : vector<16x64xf32>
    %cst_90 = arith.constant 5.000000e-01 : f32
    %275 = vector.broadcast %cst_90 : f32 to vector<16x64xf32>
    %276 = arith.mulf %275, %274 : vector<16x64xf32>
    %277 = arith.mulf %264, %276 : vector<16x64xf32>
    %c1_91 = arith.constant 1 : index
    %c0_92 = arith.constant 0 : index
    %c0_93 = arith.constant 0 : index
    %278 = vector.load %arg8[%c1_91, %c0_92, %c0_93] : memref<2x64x32xf32, #tpu.memory_space<vmem>>, vector<1x64x32xf32>
    %279 = vector.shape_cast %278 : vector<1x64x32xf32> to vector<64x32xf32>
    %cst_94 = arith.constant dense<0.000000e+00> : vector<16x32xf32>
    %280 = tpu.matmul %277, %279, %cst_94 {dimension_numbers = #tpu.dot_dimension_numbers<[1], [0], [0], [1], [0, 0, 1, 1], [], []>} : vector<16x64xf32>, vector<64x32xf32>, vector<16x32xf32> -> vector<16x32xf32>
    %281 = vector.broadcast %181 : vector<1x32xf32> to vector<16x32xf32>
    %282 = arith.addf %280, %281 : vector<16x32xf32>
    %283 = arith.addf %259, %282 : vector<16x32xf32>
    %cst_95 = arith.constant dense<0.000000e+00> : vector<16xf32>
    %284 = vector.multi_reduction <add>, %283, %cst_95 [1] : vector<16x32xf32> to vector<16xf32>
    %285 = vector.shape_cast %284 : vector<16xf32> to vector<16x1xf32>
    %cst_96 = arith.constant 3.200000e+01 : f32
    %286 = vector.broadcast %cst_96 : f32 to vector<16x1xf32>
    %287 = arith.divf %285, %286 : vector<16x1xf32>
    %288 = vector.broadcast %287 : vector<16x1xf32> to vector<16x32xf32>
    %289 = arith.subf %283, %288 : vector<16x32xf32>
    %290 = arith.mulf %289, %289 : vector<16x32xf32>
    %cst_97 = arith.constant dense<0.000000e+00> : vector<16xf32>
    %291 = vector.multi_reduction <add>, %290, %cst_97 [1] : vector<16x32xf32> to vector<16xf32>
    %292 = vector.shape_cast %291 : vector<16xf32> to vector<16x1xf32>
    %cst_98 = arith.constant 3.200000e+01 : f32
    %293 = vector.broadcast %cst_98 : f32 to vector<16x1xf32>
    %294 = arith.divf %292, %293 : vector<16x1xf32>
    %295 = vector.broadcast %287 : vector<16x1xf32> to vector<16x32xf32>
    %296 = arith.subf %283, %295 : vector<16x32xf32>
    %cst_99 = arith.constant 9.99999996E-13 : f32
    %297 = vector.broadcast %cst_99 : f32 to vector<16x1xf32>
    %298 = arith.addf %294, %297 : vector<16x1xf32>
    %299 = math.rsqrt %298 : vector<16x1xf32>
    %300 = vector.broadcast %299 : vector<16x1xf32> to vector<16x32xf32>
    %301 = arith.mulf %296, %300 : vector<16x32xf32>
    %302 = vector.broadcast %182 : vector<1x32xf32> to vector<16x32xf32>
    %303 = arith.mulf %301, %302 : vector<16x32xf32>
    %304 = vector.broadcast %183 : vector<1x32xf32> to vector<16x32xf32>
    %305 = arith.addf %303, %304 : vector<16x32xf32>
    %c0_100 = arith.constant 0 : index
    %c0_101 = arith.constant 0 : index
    %306 = vector.load %arg10[%c0_100, %c0_101] : memref<32x128xf32, #tpu.memory_space<vmem>>, vector<32x128xf32>
    %cst_102 = arith.constant dense<0.000000e+00> : vector<16x128xf32>
    %307 = tpu.matmul %305, %306, %cst_102 {dimension_numbers = #tpu.dot_dimension_numbers<[1], [0], [0], [1], [0, 0, 1, 1], [], []>} : vector<16x32xf32>, vector<32x128xf32>, vector<16x128xf32> -> vector<16x128xf32>
    %c0_103 = arith.constant 0 : index
    %c0_104 = arith.constant 0 : index
    %308 = vector.load %arg11[%c0_103, %c0_104] : memref<1x128xf32, #tpu.memory_space<vmem>>, vector<1x128xf32>
    %309 = vector.broadcast %308 : vector<1x128xf32> to vector<16x128xf32>
    %310 = arith.addf %307, %309 : vector<16x128xf32>
    %311 = vector.extract_strided_slice %310 {offsets = [0, 0], sizes = [1, 128], strides = [1, 1]} : vector<16x128xf32> to vector<1x128xf32>
    %312 = vector.extract_strided_slice %310 {offsets = [8, 0], sizes = [1, 128], strides = [1, 1]} : vector<16x128xf32> to vector<1x128xf32>
    %313 = tpu.concatenate %311, %312 in 0 : vector<1x128xf32>, vector<1x128xf32> -> vector<2x128xf32>
    %c0_105 = arith.constant 0 : index
    %c0_106 = arith.constant 0 : index
    %314 = vector.load %arg12[%c0_105, %c0_106] : memref<2x128xf32, #tpu.memory_space<vmem>>, vector<2x128xf32>
    tpu.vector_store %arg12[%c0_105, %c0_106], %313 {strides = array<i32>} : memref<2x128xf32, #tpu.memory_space<vmem>>, vector<2x128xf32>,
    return
  }
}

</mosaic_0001>

<bundles_post_ra>
// kernel: tpu_custom_call.1
= control target key start
LH: loop header
LB: loop body
LE: loop exit
PB: predicated region body
PF: predicated region fallthrough
CT: control target
= control target key end

     0   :  { %v3214_v2 = vmov 0   ;;  %s3799_s0 = inlined_call_operand.vmem [shape: s32[16,1], index: 0, kind: input, shape index: {}]   ;;  %s3800_s1 = inlined_call_operand.vmem [shape: s32[2,1,8], index: 1, kind: input, shape index: {}]   ;;  %s3801_s2 = inlined_call_operand.vmem [shape: f32[128,32], index: 2, kind: input, shape index: {}]   ;;  %s3802_s3 = inlined_call_operand.vmem [shape: f32[16,32], index: 3, kind: input, shape index: {}]   ;;  %s3803_s4 = inlined_call_operand.vmem [shape: f32[2,32], index: 4, kind: input, shape index: {}]   ;;  %s3804_s5 = inlined_call_operand.vmem [shape: f32[2,32,96], index: 5, kind: input, shape index: {}]   ;;  %s3805_s6 = inlined_call_operand.vmem [shape: f32[2,32,32], index: 6, kind: input, shape index: {}]   ;;  %s3806_s7 = inlined_call_operand.vmem [shape: f32[2,32,64], index: 7, kind: input, shape index: {}]   ;;  %s3807_s8 = inlined_call_operand.vmem [shape: f32[2,64,32], index: 8, kind: input, shape index: {}]   ;;  %s3808_s9 = inlined_call_operand.vmem [shape: f32[2,8,128], index: 9, kind: input, shape index: {}]   ;;  %s3809_s10 = inlined_call_operand.vmem [shape: f32[32,128], index: 10, kind: input, shape index: {}]   ;;  %s3810_s11 = inlined_call_operand.vmem [shape: f32[1,128], index: 11, kind: input, shape index: {}]   ;;  %s3811_s12 = inlined_call_operand.hbm [shape: f32[2,128], index: 12, kind: output, shape index: {}]  }
   0x1   :  { %v44_v0 = vld [vmem:[%s3799_s0] sm:$0xff]  ;;  %3129 = vset.pattern.permute.xlu0 %v3214_v2  ;;  %v59_v3 = vld [vmem:[%s3801_s2 + $0x8] sm:$0xff]  ;;  %v60_v4 = vld [vmem:[%s3801_s2 + $0x10] sm:$0xff] }
   0x2   :  { %v58_v1 = vld [vmem:[%s3801_s2] sm:$0xff]  ;;  %v61_v5 = vld [vmem:[%s3801_s2 + $0x18] sm:$0xff]  ;;  %47 = vperm.xlu0 %3129, %v44_v0   ;;  %v45_v8 = vld [vmem:[%s3799_s0 + $0x8] sm:$0xff] }
   0x3   :  { %v2998_v6 = vpack.c.bf16 %v59_v3, %v58_v1  ;;  %v3002_v7 = vpack.c.bf16 %v61_v5, %v60_v4  ;;  %v62_v9 = vld [vmem:[%s3801_s2 + $0x20] sm:$0xff]  ;;  %v63_v10 = vld [vmem:[%s3801_s2 + $0x28] sm:$0xff] }
   0x4   :  { %v3006_v11 = vpack.c.bf16 %v63_v10, %v62_v9 }
   0x5   :  { %2999 = vmatprep.subr.bf16.mxu0 %v2998_v6 }
   0x6   :  { %3001 = vmatpush3.bf16.msra.mxu0 %v2998_v6  ;;  %50 = vperm.xlu0 %3129, %v45_v8  }
   0x7   :  { %3003 = vmatprep.subr.bf16.mxu0 %v3002_v7 }
   0x8   :  { %17 = vsyncpa [#allocation3], 0  ;;  %v64_v12 = vld [vmem:[%s3801_s2 + $0x30] sm:$0xff]  ;;  %v65_v13 = vld [vmem:[%s3801_s2 + $0x38] sm:$0xff]  ;;  %v42_v27 = vlaneseq  ;;  %v3215_v30 = vmov 1.0   ;;  %vm152_vm2 = vcmask 261120  }
   0x9   :  { %v3010_v14 = vpack.c.bf16 %v65_v13, %v64_v12  ;;  %v66_v15 = vld [vmem:[%s3801_s2 + $0x40] sm:$0xff]  ;;  %v67_v16 = vld [vmem:[%s3801_s2 + $0x48] sm:$0xff]  ;;  %v68_v18 = vld [vmem:[%s3801_s2 + $0x50] sm:$0xff]  ;;  %vm3217_vm3 = vmmov 0   ;;  %s3218_s14 = smov 64   ;;  %s3219_s15 = smov 96  }
   0xa   :  { %3005 = vmatpush3.bf16.msra.mxu0 %v3002_v7  ;;  %v3014_v17 = vpack.c.bf16 %v67_v16, %v66_v15  ;;  %v69_v19 = vld [vmem:[%s3801_s2 + $0x58] sm:$0xff]  ;;  %v70_v21 = vld [vmem:[%s3801_s2 + $0x60] sm:$0xff]  ;;  %v71_v22 = vld [vmem:[%s3801_s2 + $0x68] sm:$0xff]  ;;  %v43_v28 = vand.u32 127, %v42_v27  ;;  %v3216_v7 = vmov 0.0   ;;  %v3378_v8 = vshrl.u32 %v42_v27, 7 }
   0xb   :  { %3007 = vmatprep.subr.bf16.mxu0 %v3006_v11  ;;  %v3018_v20 = vpack.c.bf16 %v69_v19, %v68_v18  ;;  %v3022_v23 = vpack.c.bf16 %v71_v22, %v70_v21  ;;  %v72_v24 = vld [vmem:[%s3801_s2 + $0x70] sm:$0xff]  ;;  %v73_v25 = vld [vmem:[%s3801_s2 + $0x78] sm:$0xff]  ;;  %v74_v32 = vld [vmem:[%s3802_s3] sm:$0xff]  ;;  %vm305_vm4 = vcmask 130048   ;;  %vm457_vm5 = vcmask 64512   ;;  %s3221_s20 = smov 112  }
   0xc   :  { %v3026_v26 = vpack.c.bf16 %v73_v25, %v72_v24  ;;  %v201_v49 = vld [vmem:[%s3804_s5] sm:$0xff]  ;;  %v202_v50 = vld [vmem:[%s3804_s5 + $0x8] sm:$0xff]  ;;  %v203_v51 = vld [vmem:[%s3804_s5 + $0x10] sm:$0xff]  ;;  %v3383_v9 = vsub.s32 0, %v3378_v8  ;;  %s3222_s21 = smov 48   ;;  %s3223_s27 = smov 16  }
   0xd   :  { %v3030_v52 = vpack.c.bf16 %v202_v50, %v201_v49  ;;  %v204_v53 = vld [vmem:[%s3804_s5 + $0x18] sm:$0xff]  ;;  %v2590_v62 = vld [vmem:[%s3803_s4] ss:$0 sm:$0xff]  ;;  %v2591_v0 = vld [vmem:[%s3803_s4 + $0x1] ss:$0 sm:$0xff]  ;;  %vm1220_vm6 = vcmask 523264  }
   0xe   :  { %3009 = vmatpush3.bf16.msra.mxu0 %v3006_v11  ;;  %v3034_v54 = vpack.c.bf16 %v204_v53, %v203_v51  ;;  %v3388_v10 = vld [vmem:[%s3808_s9] sm:$0xff]  ;;  %s3224_s13 = smov [#allocation2]   ;;  %vm2569_vm7 = vcmask 1040384  }
   0xf   :  { %3011 = vmatprep.subr.bf16.mxu0 %v3010_v14  ;;  %3031 = vmatprep.subr.bf16.mxu1 %v3030_v52  ;;  %v208_v11 = vrot.slane %v3388_v10, %v3383_v9  ;;  %v192_v19 = vld [vmem:[%s3800_s1] sm:$0x1]  ;;  %v193_v21 = vld [vmem:[%s3800_s1 + $0x1] sm:$0x1]  ;;  %s3220_s1 = smov 80   ;;  %s2578_s16 = sshll.u32 %s3224_s13, 4  ;;  %s2579_s16 = int_to_ptr.vmem [resolvable:$true] %s2578_s16 }
  0x10   :  { %3033 = vmatpush3.bf16.msra.mxu1 %v3030_v52  ;;  %s3190_s17 = scalar_lea.vmem %s2579_s16, 32  ;;  %p3195_p1 = scmp.lt.s32.totalorder %s2579_s16, %s2579_s16 }
  0x11   :  { %3035 = vmatprep.subr.bf16.mxu1 %v3034_v54  ;;  %p3191_p0 = scmp.ne.s32.totalorder %s2579_s16, %s3190_s17  ;;  %p3196_p2 = scmp.lt.s32.totalorder %s3190_s17, %s3190_s17 }
  0x12   :  { %3013 = vmatpush3.bf16.msra.mxu0 %v3010_v14 }
  0x13   :  { %3015 = vmatprep.subr.bf16.mxu0 %v3014_v17  ;;  %p3197_p3 = por %p3196_p2, %p3195_p1 }
  0x14   :  { %3037 = vmatpush3.bf16.msra.mxu1 %v3034_v54 }
  0x15   :  { %2814 = vmatprep.subr.mxu1 %v3216_v7  ;;  %p3198_p4 = pnand %p3197_p3, %p3191_p0 }
  0x16   :  { %3017 = vmatpush3.bf16.msra.mxu0 %v3014_v17 }
  0x17   :  { %3019 = vmatprep.subr.bf16.mxu0 %v3018_v20 }
  0x1a   :  { %3021 = vmatpush3.bf16.msra.mxu0 %v3018_v20  ;;  %v194_v20 = vcvt.s32.f32 %v192_v19 }
  0x1b   :  { %3023 = vmatprep.subr.bf16.mxu0 %v3022_v23 }
  0x1c   :  { %v196_v22 = vsub.f32 1.0, %v194_v20 }
  0x1e   :  { %3025 = vmatpush3.bf16.msra.mxu0 %v3022_v23  ;;  %v195_v23 = vcvt.s32.f32 %v193_v21  ;;  %v198_v24 = vmul.f32 -1e+09, %v196_v22 }
  0x1f   :  { %3027 = vmatprep.subr.bf16.mxu0 %v3026_v26 }
  0x20   :  { %v197_v25 = vsub.f32 1.0, %v195_v23 }
  0x22   :  { %3029 = vmatpush3.bf16.msra.mxu0 %v3026_v26  ;;  %v3422_v26 = vrot.slane %v198_v24, %v3383_v9  ;;  %v199_v27 = vmul.f32 -1e+09, %v197_v25 }
  0x81   :  { %v48_v29 = vpop.permute.xlu0 %47 }
  0x82   :  { %vm52_vm0 = vcmp.eq.s32.totalorder %v48_v29, %v43_v28 }
  0x83   :  { %2800 = vmatprep.mubr.msk.f32.mxu0 %vm52_vm0, %v3215_v30 }
  0x85   :  { %v51_v31 = vpop.permute.xlu0 %50 }
  0x86   :  { %vm53_vm1 = vcmp.eq.s32.totalorder %v51_v31, %v43_v28  ;;  %v3426_v31 = vrot.slane %v199_v27, %v3383_v9 }
  0x87   :  { %2801 = vmatmul.mubr.msk.f32.vlgmr.msra.gmra.mrb[0].mxu0 %vm53_vm1, %v3215_v30 }
 0x15a   :  { %v2802_v33 = vpop.f32.mrb[0].mxu0 }
 0x15b   :  { %v141_v34 = vpop.f32.mrb[1].mxu0  ;;  %v147_v36 = vadd.f32 %v2802_v33, %v74_v32 }
 0x15c   :  { %v142_v35 = vadd.f32 %v141_v34, %v74_v32 }
 0x15d   :  { %v156_v38 = vsel %vm152_vm2, %v147_v36, 0.0 }
 0x15e   :  { %v153_v37 = vsel %vm152_vm2, %v142_v35, 0.0 }
 0x15f   :  { %154 = vadd.xlane.f32.xlu1 %v153_v37 }
 0x163   :  { %157 = vadd.xlane.f32.xlu1 %v156_v38 }
 0x1ec   :  { %v155_v39 = vpop.xlane.xlu1 %154 }
 0x1ed   :  { %v160_v40 = vmul.f32 0.03125, %v155_v39 }
 0x1ef   :  { %v162_v41 = vsub.f32 %v142_v35, %v160_v40 }
 0x1f0   :  { %v158_v42 = vpop.xlane.xlu1 %157 }
 0x1f1   :  { %v161_v43 = vmul.f32 0.03125, %v158_v42  ;;  %v164_v44 = vmul.f32 %v162_v41, %v162_v41 }
 0x1f3   :  { %v163_v45 = vsub.f32 %v147_v36, %v161_v43  ;;  %v166_v46 = vsel %vm152_vm2, %v164_v44, 0.0 }
 0x1f4   :  { %167 = vadd.xlane.f32.xlu0 %v166_v46 }
 0x1f5   :  { %v165_v47 = vmul.f32 %v163_v45, %v163_v45 }
 0x1f7   :  { %v169_v48 = vsel %vm152_vm2, %v165_v47, 0.0 }
 0x1f8   :  { %170 = vadd.xlane.f32.xlu1 %v169_v48 }
 0x281   :  { %v168_v55 = vpop.xlane.xlu0 %167 }
 0x282   :  { %v172_v56 = vmul.f32 0.03125, %v168_v55 }
 0x284   :  { %v174_v57 = vadd.f32 1e-12, %v172_v56 }
 0x285   :  { %v171_v58 = vpop.xlane.xlu1 %170 }
 0x286   :  { %3130 = vrsqrt.f32 %v174_v57  ;;  %v173_v59 = vmul.f32 0.03125, %v171_v58 }
 0x288   :  { %v175_v60 = vadd.f32 1e-12, %v173_v59 }
 0x28a   :  { %3132 = vrsqrt.f32 %v175_v60 }
 0x290   :  { %v3131_v61 = vpop.eup %3130 }
 0x291   :  { %v178_v63 = vmul.f32 %v3131_v61, %v162_v41 }
 0x293   :  { %v184_v1 = vmul.f32 %v2590_v62, %v178_v63 }
 0x294   :  { %v3133_v2 = vpop.eup %3132 }
 0x295   :  { %v179_v3 = vmul.f32 %v3133_v2, %v163_v45  ;;  %v3369_v4 = vadd.f32 %v2591_v0, %v184_v1 }
 0x297   :  { %v185_v5 = vmul.f32 %v2590_v62, %v179_v3  ;;  %2811 = vmatprep.mubr.msk.f32.mxu1 %vm152_vm2, %v3369_v4 }
 0x299   :  { %v3373_v6 = vadd.f32 %v2591_v0, %v185_v5 }
 0x29b   :  { %2812 = vmatmul.mubr.msk.f32.vlgmr.msra.gmra.mrb[0].mxu1 %vm152_vm2, %v3373_v6 }
 0x29c   :  { %2816 = vmatprep.mubr.msk.f32.mxu1 %vm3217_vm3, %v3216_v7 }
 0x36e   :  { %v2813_v12 = vpop.f32.mrb[0].mxu1 }
 0x36f   :  { %v281_v13 = vpop.f32.mrb[1].mxu1  ;;  %v3398_v15 = vadd.f32 %v2813_v12, %v208_v11 }
 0x370   :  { %v3392_v14 = vadd.f32 %v281_v13, %v208_v11 }
 0x372   :  { %480 = vrot.lane.b32.xlu0 %v3392_v14, %s3218_s14  ;;  %303 = vrot.lane.b32.xlu1 %v3392_v14, %s3219_s15 }
 0x376   :  { %381 = vrot.lane.b32.xlu1 %v3398_v15, %s3219_s15 }
 0x3e4   :  { %v304_v16 = vpop.permute.xlu1 %303  ;;  %v481_v18 = vpop.permute.xlu0 %480 }
 0x3e5   :  { %2815 = vmatpush3.xpose.msk.msra.mxu1 %vm305_vm4, %v304_v16 }
 0x3e6   :  { %2819 = vmatprep.subr.mxu1 %v3216_v7 }
 0x3e8   :  { %2817 = vmatmul.mubr.msk.f32.vlgmr.msra.gmra.mrb[2].mxu1 %vm305_vm4, %v3392_v14  ;;  %v382_v17 = vpop.permute.xlu1 %381 }
 0x3e9   :  { %2820 = vmatpush3.xpose.msk.msra.mxu1 %vm305_vm4, %v382_v17  ;;  %2821 = vmatprep.mubr.msk.f32.mxu1 %vm3217_vm3, %v3216_v7 }
 0x3ea   :  { %2824 = vmatprep.subr.mxu1 %v3216_v7 }
 0x3ec   :  { %2822 = vmatmul.mubr.msk.f32.vlgmr.msra.gmra.mrb[4].mxu1 %vm305_vm4, %v3398_v15 }
 0x3ed   :  { %2825 = vmatpush3.msra.mxu1 %v481_v18  ;;  %2826 = vmatprep.mubr.msk.f32.mxu1 %vm3217_vm3, %v3216_v7 }
 0x3ee   :  { %2829 = vmatprep.subr.mxu1 %v3216_v7 }
 0x4bb   :  { %v376_v28 = vpop.f32.mrb[2].mxu1 }
 0x4bc   :  { %v377_v29 = vadd.f32 %v376_v28, %v3422_v26  ;;  %v2818_v30 = vpop.f32.mrb[3].mxu1 }
 0x4be   :  { %v458_v32 = vsel %vm457_vm5, %v377_v29, -inf }
 0x4bf   :  { %459 = vmax.xlane.f32.xlu1 %v458_v32  ;;  %v453_v33 = vpop.f32.mrb[4].mxu1 }
 0x4c0   :  { %v454_v34 = vadd.f32 %v453_v33, %v3426_v31  ;;  %v2823_v35 = vpop.f32.mrb[5].mxu1  ;;  %v973_v33 = vld [vmem:[%s3805_s6 + $0x8] sm:$0xff] }
 0x4c1   :  { %v974_v35 = vld [vmem:[%s3805_s6 + $0x10] sm:$0xff] }
 0x4c2   :  { %v461_v36 = vsel %vm457_vm5, %v454_v34, -inf }
 0x4c3   :  { %462 = vmax.xlane.f32.xlu0 %v461_v36  ;;  %v975_v36 = vld [vmem:[%s3805_s6 + $0x18] sm:$0xff] }
 0x4d0   :  { %556 = vrot.lane.b32.xlu1 %v3398_v15, %s3218_s14 }
 0x4d9   :  { %634 = vrot.lane.b32.xlu0 %v3392_v14, %s3220_s1 }
 0x54c   :  { %v460_v37 = vpop.xlane.xlu1 %459 }
 0x54d   :  { %v464_v38 = vsub.f32 %v377_v29, %v460_v37  ;;  %v3042_v37 = vpack.c.bf16 %v975_v36, %v974_v35  ;;  %v1210_v35 = vld [vmem:[%s3807_s8 + $0x10] sm:$0xff]  ;;  %v1211_v36 = vld [vmem:[%s3807_s8 + $0x18] sm:$0xff] }
 0x54f   :  { %v466_v39 = vmul.f32 1.442695, %v464_v38 }
 0x550   :  { %v463_v42 = vpop.xlane.xlu0 %462  ;;  %v557_v51 = vpop.permute.xlu1 %556 }
 0x551   :  { %3134 = vpow2.f32 %v466_v39  ;;  %v465_v43 = vsub.f32 %v454_v34, %v463_v42 }
 0x553   :  { %v468_v44 = vmul.f32 1.442695, %v465_v43 }
 0x554   :  { %v635_v47 = vpop.permute.xlu0 %634 }
 0x555   :  { %3136 = vpow2.f32 %v468_v44 }
 0x55b   :  { %v3135_v40 = vpop.eup %3134 }
 0x55c   :  { %v470_v41 = vsel %vm457_vm5, %v3135_v40, 0.0 }
 0x55d   :  { %471 = vadd.xlane.f32.xlu0 %v470_v41 }
 0x55f   :  { %v3137_v45 = vpop.eup %3136 }
 0x560   :  { %v473_v46 = vsel %vm457_vm5, %v3137_v45, 0.0 }
 0x573   :  { %632 = vrot.lane.b32.xlu0 %v3392_v14, %s3221_s20 }
 0x592   :  { %474 = vadd.xlane.f32.xlu0 %v473_v46  ;;  %v978_v46 = vsub.s32 1, %v3378_v8 }
 0x5a8   :  { %712 = vrot.lane.b32.xlu0 %v3398_v15, %s3220_s1 }
 0x5ac   :  { %710 = vrot.lane.b32.xlu0 %v3398_v15, %s3221_s20 }
 0x5ea   :  { %v472_v48 = vpop.xlane.xlu0 %471 }
 0x5eb   :  { %3138 = vrcp.f32 %v472_v48 }
 0x5ee   :  { %v633_v52 = vpop.permute.xlu0 %632 }
 0x5f5   :  { %v3139_v49 = vpop.eup %3138 }
 0x5f6   :  { %v478_v50 = vmul.f32 %v3139_v49, %v3135_v40 }
 0x5f8   :  { %2827 = vmatmul.mubr.msk.f32.vlgmr.msra.gmra.mrb[6].mxu1 %vm457_vm5, %v478_v50 }
 0x5f9   :  { %2830 = vmatpush3.msra.mxu1 %v557_v51  ;;  %2831 = vmatprep.mubr.msk.f32.mxu1 %vm3217_vm3, %v3216_v7 }
 0x5fa   :  { %2834 = vmatprep.subr.mxu1 %v3216_v7 }
 0x61f   :  { %v475_v53 = vpop.xlane.xlu0 %474 }
 0x620   :  { %3140 = vrcp.f32 %v475_v53 }
 0x623   :  { %v713_v56 = vpop.permute.xlu0 %712 }
 0x627   :  { %v711_v57 = vpop.permute.xlu0 %710 }
 0x62a   :  { %v3141_v54 = vpop.eup %3140 }
 0x62b   :  { %v479_v55 = vmul.f32 %v3141_v54, %v3137_v45 }
 0x62d   :  { %2832 = vmatmul.mubr.msk.f32.vlgmr.msra.gmra.mrb[8].mxu1 %vm457_vm5, %v479_v55 }
 0x62e   :  { %2835 = vmatpush3.xpose.msk.msra.mxu1 %vm305_vm4, %v635_v47  ;;  %2836 = vmatprep.mubr.msk.f32.mxu1 %vm3217_vm3, %v3216_v7  ;;  %v979_v47 = vrot.slane %v3388_v10, %v978_v46 }
 0x62f   :  { %2839 = vmatprep.subr.mxu1 %v3216_v7 }
 0x631   :  { %2837 = vmatmul.mubr.msk.f32.vlgmr.msra.gmra.mrb[10].mxu1 %vm305_vm4, %v633_v52 }
 0x632   :  { %2840 = vmatpush3.xpose.msk.msra.mxu1 %vm305_vm4, %v713_v56  ;;  %2841 = vmatprep.mubr.msk.f32.mxu1 %vm3217_vm3, %v3216_v7 }
 0x633   :  { %2844 = vmatprep.subr.mxu1 %v3216_v7 }
 0x635   :  { %2842 = vmatmul.mubr.msk.f32.vlgmr.msra.gmra.mrb[12].mxu1 %vm305_vm4, %v711_v57 }
 0x636   :  { %2846 = vmatprep.mubr.msk.f32.mxu1 %vm3217_vm3, %v3216_v7 }
 0x6cb   :  { %v3460_v58 = vpop.f32.mrb[6].mxu1 }
 0x6cc   :  { %v2828_v59 = vpop.f32.mrb[7].mxu1 }
 0x700   :  { %v3462_v60 = vpop.f32.mrb[8].mxu1 }
 0x701   :  { %v2833_v61 = vpop.f32.mrb[9].mxu1 }
 0x704   :  { %v706_v62 = vpop.f32.mrb[10].mxu1 }
 0x705   :  { %v707_v63 = vadd.f32 %v706_v62, %v3422_v26  ;;  %v2838_v0 = vpop.f32.mrb[11].mxu1 }
 0x707   :  { %v788_v1 = vsel %vm457_vm5, %v707_v63, -inf }
 0x708   :  { %789 = vmax.xlane.f32.xlu1 %v788_v1  ;;  %v784_v2 = vpop.f32.mrb[12].mxu1  ;;  %v1102_v1 = vld [vmem:[%s3806_s7 + $0x8] sm:$0xff] }
 0x709   :  { %v785_v3 = vadd.f32 %v784_v2, %v3426_v31  ;;  %v2843_v5 = vpop.f32.mrb[13].mxu1 }
 0x70a   :  { %v1104_v5 = vld [vmem:[%s3806_s7 + $0x18] sm:$0xff] }
 0x70b   :  { %v791_v11 = vsel %vm457_vm5, %v785_v3, -inf }
 0x70c   :  { %792 = vmax.xlane.f32.xlu0 %v791_v11 }
 0x795   :  { %v790_v12 = vpop.xlane.xlu1 %789 }
 0x796   :  { %v794_v13 = vsub.f32 %v707_v63, %v790_v12 }
 0x798   :  { %v796_v16 = vmul.f32 1.442695, %v794_v13 }
 0x799   :  { %v793_v17 = vpop.xlane.xlu0 %792 }
 0x79a   :  { %3142 = vpow2.f32 %v796_v16  ;;  %v795_v18 = vsub.f32 %v785_v3, %v793_v17  ;;  %v1103_v3 = vld [vmem:[%s3806_s7 + $0x10] sm:$0xff] }
 0x79b   :  { %v3050_v11 = vpack.c.bf16 %v1104_v5, %v1103_v3  ;;  %v1218_v3 = vsub.s32 5, %v3378_v8 }
 0x79c   :  { %v798_v19 = vmul.f32 1.442695, %v795_v18 }
 0x79d   :  { %v1219_v5 = vrot.slane %v3388_v10, %v1218_v3 }
 0x79e   :  { %3144 = vpow2.f32 %v798_v19 }
 0x7a4   :  { %v3143_v20 = vpop.eup %3142 }
 0x7a5   :  { %v800_v21 = vsel %vm457_vm5, %v3143_v20, 0.0 }
 0x7a6   :  { %801 = vadd.xlane.f32.xlu0 %v800_v21  ;;  %v1097_v21 = vsub.s32 3, %v3378_v8 }
 0x7a8   :  { %v3145_v22 = vpop.eup %3144 }
 0x7a9   :  { %v803_v23 = vsel %vm457_vm5, %v3145_v22, 0.0 }
 0x7aa   :  { %804 = vadd.xlane.f32.xlu1 %v803_v23 }
 0x7bb   :  { %886 = vrot.lane.b32.xlu1 %v3398_v15, %s3222_s21 }
 0x7bc   :  { %810 = vrot.lane.b32.xlu0 %v3392_v14, %s3222_s21  ;;  %v972_v14 = vld [vmem:[%s3805_s6] sm:$0xff] }
 0x7bd   :  { %v3038_v34 = vpack.c.bf16 %v973_v33, %v972_v14  ;;  %v1208_v14 = vld [vmem:[%s3807_s8] sm:$0xff]  ;;  %v1209_v33 = vld [vmem:[%s3807_s8 + $0x8] sm:$0xff] }
 0x7bf   :  { %3039 = vmatprep.subr.bf16.mxu0 %v3038_v34 }
 0x7c0   :  { %3041 = vmatpush3.bf16.msra.mxu0 %v3038_v34  ;;  %v3054_v34 = vpack.c.bf16 %v1209_v33, %v1208_v14 }
 0x7c1   :  { %3043 = vmatprep.subr.bf16.mxu0 %v3042_v37 }
 0x7c4   :  { %3045 = vmatpush3.bf16.msra.mxu0 %v3042_v37  ;;  %v3058_v37 = vpack.c.bf16 %v1211_v36, %v1210_v35  ;;  %v2615_v36 = vld [vmem:[%s3804_s5 + $0x30] sm:$0xff] }
 0x7c5   :  { %3055 = vmatprep.subr.bf16.mxu0 %v3054_v34 }
 0x833   :  { %v802_v24 = vpop.xlane.xlu0 %801 }
 0x834   :  { %3146 = vrcp.f32 %v802_v24 }
 0x837   :  { %v805_v25 = vpop.xlane.xlu1 %804  ;;  %v811_v27 = vpop.permute.xlu0 %810 }
 0x838   :  { %3148 = vrcp.f32 %v805_v25  ;;  %2845 = vmatpush3.msra.mxu1 %v811_v27 }
 0x839   :  { %2849 = vmatprep.subr.mxu1 %v3216_v7 }
 0x83b   :  { %v887_v30 = vpop.permute.xlu1 %886 }
 0x83e   :  { %v3147_v28 = vpop.eup %3146 }
 0x83f   :  { %v808_v29 = vmul.f32 %v3147_v28, %v3143_v20  ;;  %v1091_v20 = vsub.s32 2, %v3378_v8  ;;  %v1098_v28 = vrot.slane %v3388_v10, %v1097_v21 }
 0x841   :  { %2847 = vmatmul.mubr.msk.f32.vlgmr.msra.gmra.mrb[14].mxu1 %vm457_vm5, %v808_v29 }
 0x842   :  { %v3149_v32 = vpop.eup %3148  ;;  %2850 = vmatpush3.msra.mxu1 %v887_v30  ;;  %2851 = vmatprep.mubr.msk.f32.mxu1 %vm3217_vm3, %v3216_v7 }
 0x843   :  { %v809_v15 = vmul.f32 %v3149_v32, %v3145_v22  ;;  %v1092_v22 = vrot.slane %v3388_v10, %v1091_v20 }
 0x845   :  { %2852 = vmatmul.mubr.msk.f32.vlgmr.msra.gmra.mrb[16].mxu1 %vm457_vm5, %v809_v15 }
 0x914   :  { %v882_v38 = vpop.f32.mrb[14].mxu1 }
 0x915   :  { %964 = vrot.lane.b32.xlu1 %v882_v38, %s3223_s27  ;;  %v2848_v39 = vpop.f32.mrb[15].mxu1  ;;  %v1212_v38 = vld [vmem:[%s3807_s8 + $0x20] sm:$0xff] }
 0x916   :  { %v1213_v39 = vld [vmem:[%s3807_s8 + $0x28] sm:$0xff] }
 0x918   :  { %v958_v40 = vpop.f32.mrb[16].mxu1 }
 0x919   :  { %966 = vrot.lane.b32.xlu0 %v958_v40, %s3223_s27  ;;  %v2853_v41 = vpop.f32.mrb[17].mxu1  ;;  %v3062_v40 = vpack.c.bf16 %v1213_v39, %v1212_v38 }
 0x91a   :  { %v1214_v41 = vld [vmem:[%s3807_s8 + $0x30] sm:$0xff] }
 0x987   :  { %v965_v42 = vpop.permute.xlu1 %964 }
 0x988   :  { %v970_v43 = vsel %vm305_vm4, %v3460_v58, %v965_v42  ;;  %v1215_v42 = vld [vmem:[%s3807_s8 + $0x38] sm:$0xff] }
 0x989   :  { %2862 = vmatprep.mubr.msk.f32.mxu0 %vm152_vm2, %v970_v43  ;;  %v3066_v43 = vpack.c.bf16 %v1215_v42, %v1214_v41 }
 0x98b   :  { %v967_v44 = vpop.permute.xlu0 %966 }
 0x98c   :  { %v971_v45 = vsel %vm305_vm4, %v3462_v60, %v967_v44  ;;  %v1107_v44 = vsub.s32 4, %v3378_v8 }
 0x98d   :  { %2863 = vmatmul.mubr.msk.f32.vlgmr.msra.gmra.mrb[2].mxu0 %vm152_vm2, %v971_v45 }
 0x98e   :  { %3057 = vmatpush3.bf16.msra.mxu0 %v3054_v34  ;;  %v1108_v45 = vrot.slane %v3388_v10, %v1107_v44  ;;  %v2614_v34 = vld [vmem:[%s3804_s5 + $0x28] sm:$0xff] }
 0x98f   :  { %3059 = vmatprep.subr.bf16.mxu0 %v3058_v37 }
 0x992   :  { %3061 = vmatpush3.bf16.msra.mxu0 %v3058_v37  ;;  %v2616_v37 = vld [vmem:[%s3804_s5 + $0x38] sm:$0xff] }
 0x993   :  { %3063 = vmatprep.subr.bf16.mxu0 %v3062_v40  ;;  %v3074_v38 = vpack.c.bf16 %v2616_v37, %v2615_v36 }
 0x996   :  { %3065 = vmatpush3.bf16.msra.mxu0 %v3062_v40 }
 0x997   :  { %3067 = vmatprep.subr.bf16.mxu0 %v3066_v43 }
 0x99a   :  { %3069 = vmatpush3.bf16.msra.mxu0 %v3066_v43 }
 0x99b   :  { %2916 = vmatprep.subr.mxu0 %v3216_v7 }
 0xa60   :  { %v2864_v48 = vpop.f32.mrb[2].mxu0 }
 0xa61   :  { %v1058_v49 = vadd.f32 %v2864_v48, %v979_v47  ;;  %v1052_v50 = vpop.f32.mrb[3].mxu0 }
 0xa62   :  { %v1053_v51 = vadd.f32 %v1052_v50, %v979_v47 }
 0xa63   :  { %v1062_v52 = vadd.f32 %v1058_v49, %v3373_v6 }
 0xa64   :  { %v1061_v53 = vadd.f32 %v1053_v51, %v3369_v4  ;;  %v1101_v4 = vld [vmem:[%s3806_s7] sm:$0xff] }
 0xa65   :  { %v1066_v54 = vsel %vm152_vm2, %v1062_v52, 0.0  ;;  %v3046_v2 = vpack.c.bf16 %v1102_v1, %v1101_v4 }
 0xa66   :  { %1067 = vadd.xlane.f32.xlu0 %v1066_v54  ;;  %v1063_v55 = vsel %vm152_vm2, %v1061_v53, 0.0 }
 0xa67   :  { %1064 = vadd.xlane.f32.xlu1 %v1063_v55  ;;  %3047 = vmatprep.subr.bf16.mxu1 %v3046_v2 }
 0xa68   :  { %3049 = vmatpush3.bf16.msra.mxu1 %v3046_v2 }
 0xa69   :  { %3051 = vmatprep.subr.bf16.mxu1 %v3050_v11 }
 0xa6c   :  { %3053 = vmatpush3.bf16.msra.mxu1 %v3050_v11 }
 0xaf3   :  { %v1068_v56 = vpop.xlane.xlu0 %1067 }
 0xaf4   :  { %v1070_v57 = vmul.f32 0.03125, %v1068_v56  ;;  %v1065_v58 = vpop.xlane.xlu1 %1064 }
 0xaf5   :  { %v1069_v59 = vmul.f32 0.03125, %v1065_v58 }
 0xaf6   :  { %v1072_v60 = vsub.f32 %v1062_v52, %v1070_v57 }
 0xaf7   :  { %v1071_v61 = vsub.f32 %v1061_v53, %v1069_v59 }
 0xaf8   :  { %v1074_v62 = vmul.f32 %v1072_v60, %v1072_v60 }
 0xaf9   :  { %v1073_v63 = vmul.f32 %v1071_v61, %v1071_v61 }
 0xafa   :  { %v1078_v0 = vsel %vm152_vm2, %v1074_v62, 0.0 }
 0xafb   :  { %1079 = vadd.xlane.f32.xlu1 %v1078_v0  ;;  %v1075_v6 = vsel %vm152_vm2, %v1073_v63, 0.0 }
 0xafc   :  { %1076 = vadd.xlane.f32.xlu0 %v1075_v6 }
 0xb88   :  { %v1080_v12 = vpop.xlane.xlu1 %1079 }
 0xb89   :  { %v1082_v13 = vmul.f32 0.03125, %v1080_v12  ;;  %v1077_v16 = vpop.xlane.xlu0 %1076 }
 0xb8a   :  { %v1081_v17 = vmul.f32 0.03125, %v1077_v16 }
 0xb8b   :  { %v1084_v18 = vadd.f32 1e-12, %v1082_v13 }
 0xb8c   :  { %v1083_v19 = vadd.f32 1e-12, %v1081_v17 }
 0xb8d   :  { %3150 = vrsqrt.f32 %v1084_v18 }
 0xb8e   :  { %3152 = vrsqrt.f32 %v1083_v19 }
 0xb97   :  { %v3151_v23 = vpop.eup %3150 }
 0xb98   :  { %v3153_v24 = vpop.eup %3152  ;;  %v1088_v25 = vmul.f32 %v3151_v23, %v1072_v60 }
 0xb99   :  { %v1087_v27 = vmul.f32 %v3153_v24, %v1071_v61 }
 0xb9a   :  { %v1094_v29 = vmul.f32 %v1092_v22, %v1088_v25 }
 0xb9b   :  { %v1093_v30 = vmul.f32 %v1092_v22, %v1087_v27 }
 0xb9c   :  { %v1100_v15 = vadd.f32 %v1098_v28, %v1094_v29 }
 0xb9d   :  { %v1099_v32 = vadd.f32 %v1098_v28, %v1093_v30 }
 0xb9f   :  { %2873 = vmatprep.mubr.msk.f32.mxu1 %vm152_vm2, %v1099_v32 }
 0xba0   :  { %2874 = vmatmul.mubr.msk.f32.vlgmr.msra.gmra.mrb[18].mxu1 %vm152_vm2, %v1100_v15 }
 0xc73   :  { %v2875_v47 = vpop.f32.mrb[18].mxu1 }
 0xc74   :  { %v1187_v48 = vadd.f32 %v2875_v47, %v1108_v45  ;;  %v1181_v49 = vpop.f32.mrb[19].mxu1  ;;  %v1332_v47 = vsub.s32 6, %v3378_v8 }
 0xc75   :  { %v1182_v50 = vadd.f32 %v1181_v49, %v1108_v45 }
 0xc76   :  { %v1191_v51 = vmul.f32 %v1187_v48, %v1187_v48  ;;  %v1333_v49 = vrot.slane %v3388_v10, %v1332_v47 }
 0xc77   :  { %v1190_v52 = vmul.f32 %v1182_v50, %v1182_v50 }
 0xc78   :  { %v1193_v53 = vmul.f32 %v1191_v51, %v1187_v48 }
 0xc79   :  { %v1192_v54 = vmul.f32 %v1190_v52, %v1182_v50 }
 0xc7a   :  { %v1195_v55 = vmul.f32 0.044715, %v1193_v53 }
 0xc7b   :  { %v1194_v56 = vmul.f32 0.044715, %v1192_v54 }
 0xc7c   :  { %v1197_v57 = vadd.f32 %v1195_v55, %v1187_v48 }
 0xc7d   :  { %v1196_v58 = vadd.f32 %v1194_v56, %v1182_v50 }
 0xc7e   :  { %v1199_v59 = vmul.f32 0.7978846, %v1197_v57 }
 0xc7f   :  { %v1198_v60 = vmul.f32 0.7978846, %v1196_v58 }
 0xc80   :  { %3154 = vtanh.f32 %v1199_v59  ;;  %v3606_v59 = vld [vmem:[%s3808_s9 + $0x8] sm:$0xff] }
 0xc81   :  { %3156 = vtanh.f32 %v1198_v60 }
 0xc8a   :  { %v3155_v61 = vpop.eup %3154 }
 0xc8b   :  { %v3157_v62 = vpop.eup %3156  ;;  %v1203_v63 = vadd.f32 1.0, %v3155_v61 }
 0xc8c   :  { %v1202_v0 = vadd.f32 1.0, %v3157_v62 }
 0xc8d   :  { %v1205_v6 = vmul.f32 0.5, %v1203_v63 }
 0xc8e   :  { %v1204_v4 = vmul.f32 0.5, %v1202_v0 }
 0xc8f   :  { %v1207_v2 = vmul.f32 %v1205_v6, %v1187_v48  ;;  %v1338_v48 = vsub.s32 7, %v3378_v8 }
 0xc90   :  { %v1206_v1 = vmul.f32 %v1204_v4, %v1182_v50 }
 0xc91   :  { %v1339_v54 = vrot.slane %v3388_v10, %v1338_v48  ;;  %v1352_v10 = vrot.slane %v3606_v59, %v3383_v9 }
 0xc92   :  { %2892 = vmatprep.mubr.msk.f32.mxu0 %vm1220_vm6, %v1206_v1 }
 0xc93   :  { %2893 = vmatmul.mubr.msk.f32.vlgmr.msra.gmra.mrb[4].mxu0 %vm1220_vm6, %v1207_v2 }
 0xc94   :  { %2918 = vmatprep.mubr.msk.f32.mxu0 %vm3217_vm3, %v3216_v7 }
 0xd66   :  { %v2894_v11 = vpop.f32.mrb[4].mxu0 }
 0xd67   :  { %v1299_v12 = vadd.f32 %v2894_v11, %v1219_v5  ;;  %v1293_v13 = vpop.f32.mrb[5].mxu0 }
 0xd68   :  { %v1294_v16 = vadd.f32 %v1293_v13, %v1219_v5 }
 0xd69   :  { %v1303_v17 = vadd.f32 %v1299_v12, %v1100_v15 }
 0xd6a   :  { %v1302_v18 = vadd.f32 %v1294_v16, %v1099_v32  ;;  %v2613_v32 = vld [vmem:[%s3804_s5 + $0x20] sm:$0xff] }
 0xd6b   :  { %v1307_v19 = vsel %vm152_vm2, %v1303_v17, 0.0  ;;  %v3070_v35 = vpack.c.bf16 %v2614_v34, %v2613_v32 }
 0xd6c   :  { %1308 = vadd.xlane.f32.xlu1 %v1307_v19  ;;  %v1304_v22 = vsel %vm152_vm2, %v1302_v18, 0.0 }
 0xd6d   :  { %1305 = vadd.xlane.f32.xlu0 %v1304_v22  ;;  %3071 = vmatprep.subr.bf16.mxu1 %v3070_v35 }
 0xd6e   :  { %3073 = vmatpush3.bf16.msra.mxu1 %v3070_v35 }
 0xd6f   :  { %3075 = vmatprep.subr.bf16.mxu1 %v3074_v38 }
 0xd72   :  { %3077 = vmatpush3.bf16.msra.mxu1 %v3074_v38 }
 0xd73   :  { %2906 = vmatprep.subr.mxu1 %v3216_v7 }
 0xdf9   :  { %v1309_v23 = vpop.xlane.xlu1 %1308 }
 0xdfa   :  { %v1311_v24 = vmul.f32 0.03125, %v1309_v23  ;;  %v1306_v25 = vpop.xlane.xlu0 %1305 }
 0xdfb   :  { %v1310_v27 = vmul.f32 0.03125, %v1306_v25 }
 0xdfc   :  { %v1313_v28 = vsub.f32 %v1303_v17, %v1311_v24 }
 0xdfd   :  { %v1312_v29 = vsub.f32 %v1302_v18, %v1310_v27 }
 0xdfe   :  { %v1315_v30 = vmul.f32 %v1313_v28, %v1313_v28 }
 0xdff   :  { %v1314_v14 = vmul.f32 %v1312_v29, %v1312_v29 }
 0xe00   :  { %v1319_v33 = vsel %vm152_vm2, %v1315_v30, 0.0 }
 0xe01   :  { %1320 = vadd.xlane.f32.xlu1 %v1319_v33  ;;  %v1316_v15 = vsel %vm152_vm2, %v1314_v14, 0.0 }
 0xe02   :  { %1317 = vadd.xlane.f32.xlu0 %v1316_v15 }
 0xe8e   :  { %v1321_v39 = vpop.xlane.xlu1 %1320 }
 0xe8f   :  { %v1323_v40 = vmul.f32 0.03125, %v1321_v39  ;;  %v1318_v41 = vpop.xlane.xlu0 %1317 }
 0xe90   :  { %v1322_v42 = vmul.f32 0.03125, %v1318_v41 }
 0xe91   :  { %v1325_v43 = vadd.f32 1e-12, %v1323_v40 }
 0xe92   :  { %v1324_v45 = vadd.f32 1e-12, %v1322_v42 }
 0xe93   :  { %3158 = vrsqrt.f32 %v1325_v43 }
 0xe94   :  { %3160 = vrsqrt.f32 %v1324_v45 }
 0xe9d   :  { %v3159_v50 = vpop.eup %3158 }
 0xe9e   :  { %v3161_v51 = vpop.eup %3160  ;;  %v1329_v52 = vmul.f32 %v3159_v50, %v1313_v28 }
 0xe9f   :  { %v1328_v53 = vmul.f32 %v3161_v51, %v1312_v29 }
 0xea0   :  { %v1335_v55 = vmul.f32 %v1333_v49, %v1329_v52 }
 0xea1   :  { %v1334_v56 = vmul.f32 %v1333_v49, %v1328_v53 }
 0xea2   :  { %v3595_v58 = vadd.f32 %v1339_v54, %v1335_v55 }
 0xea3   :  { %v3593_v57 = vadd.f32 %v1339_v54, %v1334_v56 }
 0xea5   :  { %2903 = vmatprep.mubr.msk.f32.mxu1 %vm152_vm2, %v3593_v57 }
 0xea6   :  { %2904 = vmatmul.mubr.msk.f32.vlgmr.msra.gmra.mrb[20].mxu1 %vm152_vm2, %v3595_v58 }
 0xea7   :  { %2908 = vmatprep.mubr.msk.f32.mxu1 %vm3217_vm3, %v3216_v7 }
 0xf79   :  { %v2905_v60 = vpop.f32.mrb[20].mxu1 }
 0xf7a   :  { %v3610_v61 = vadd.f32 %v2905_v60, %v1352_v10  ;;  %v1425_v62 = vpop.f32.mrb[21].mxu1 }
 0xf7b   :  { %v3612_v63 = vadd.f32 %v1425_v62, %v1352_v10 }
 0xf7c   :  { %1512 = vrot.lane.b32.xlu1 %v3610_v61, %s3219_s15 }
 0xf7d   :  { %1435 = vrot.lane.b32.xlu0 %v3612_v63, %s3219_s15 }
 0xfee   :  { %v1513_v6 = vpop.permute.xlu1 %1512 }
 0xfef   :  { %v1436_v0 = vpop.permute.xlu0 %1435 }
 0xff0   :  { %2907 = vmatpush3.xpose.msk.msra.mxu1 %vm305_vm4, %v1436_v0 }
 0xff1   :  { %2911 = vmatprep.subr.mxu1 %v3216_v7 }
 0xff3   :  { %2909 = vmatmul.mubr.msk.f32.vlgmr.msra.gmra.mrb[22].mxu1 %vm305_vm4, %v3612_v63 }
 0xff4   :  { %2912 = vmatpush3.xpose.msk.msra.mxu1 %vm305_vm4, %v1513_v6  ;;  %2913 = vmatprep.mubr.msk.f32.mxu1 %vm3217_vm3, %v3216_v7 }
 0xff5   :  { %2921 = vmatprep.subr.mxu1 %v3216_v7 }
 0xff7   :  { %2914 = vmatmul.mubr.msk.f32.vlgmr.msra.gmra.mrb[24].mxu1 %vm305_vm4, %v3610_v61 }
 0xff8   :  { %2923 = vmatprep.mubr.msk.f32.mxu1 %vm3217_vm3, %v3216_v7 }
0x10c6   :  { %v1507_v9 = vpop.f32.mrb[22].mxu1 }
0x10c7   :  { %v1508_v4 = vadd.f32 %v1507_v9, %v3422_v26  ;;  %v2910_v1 = vpop.f32.mrb[23].mxu1 }
0x10c9   :  { %v1588_v2 = vsel %vm457_vm5, %v1508_v4, -inf }
0x10ca   :  { %1589 = vmax.xlane.f32.xlu1 %v1588_v2  ;;  %v1584_v5 = vpop.f32.mrb[24].mxu1 }
0x10cb   :  { %v1585_v11 = vadd.f32 %v1584_v5, %v3426_v31  ;;  %v2915_v12 = vpop.f32.mrb[25].mxu1 }
0x10cd   :  { %v1591_v13 = vsel %vm457_vm5, %v1585_v11, -inf }
0x10ce   :  { %1592 = vmax.xlane.f32.xlu0 %v1591_v13 }
0x10db   :  { %1686 = vrot.lane.b32.xlu1 %v3610_v61, %s3218_s14 }
0x10df   :  { %1764 = vrot.lane.b32.xlu1 %v3612_v63, %s3220_s1 }
0x10e4   :  { %1610 = vrot.lane.b32.xlu0 %v3612_v63, %s3218_s14 }
0x1157   :  { %v1590_v16 = vpop.xlane.xlu1 %1589 }
0x1158   :  { %v1594_v17 = vsub.f32 %v1508_v4, %v1590_v16 }
0x115a   :  { %v1596_v18 = vmul.f32 1.442695, %v1594_v17 }
0x115b   :  { %v1687_v19 = vpop.permute.xlu1 %1686  ;;  %v1593_v22 = vpop.xlane.xlu0 %1592 }
0x115c   :  { %3162 = vpow2.f32 %v1596_v18  ;;  %v1595_v23 = vsub.f32 %v1585_v11, %v1593_v22  ;;  %2922 = vmatpush3.msra.mxu1 %v1687_v19  ;;  %v2633_v18 = vld [vmem:[%s3805_s6 + $0x30] sm:$0xff]  ;;  %v2634_v19 = vld [vmem:[%s3805_s6 + $0x38] sm:$0xff] }
0x115d   :  { %2931 = vmatprep.subr.mxu1 %v3216_v7  ;;  %v3082_v22 = vpack.c.bf16 %v2634_v19, %v2633_v18  ;;  %v2647_v18 = vld [vmem:[%s3807_s8 + $0x60] sm:$0xff]  ;;  %v2648_v19 = vld [vmem:[%s3807_s8 + $0x68] sm:$0xff] }
0x115e   :  { %v1598_v24 = vmul.f32 1.442695, %v1595_v23 }
0x115f   :  { %v1611_v25 = vpop.permute.xlu0 %1610  ;;  %v1765_v14 = vpop.permute.xlu1 %1764 }
0x1160   :  { %3164 = vpow2.f32 %v1598_v24  ;;  %2917 = vmatpush3.msra.mxu0 %v1611_v25 }
0x1161   :  { %2926 = vmatprep.subr.mxu0 %v3216_v7 }
0x1166   :  { %v3163_v27 = vpop.eup %3162 }
0x1167   :  { %v1600_v28 = vsel %vm457_vm5, %v3163_v27, 0.0 }
0x1168   :  { %1601 = vadd.xlane.f32.xlu0 %v1600_v28 }
0x116a   :  { %v3165_v29 = vpop.eup %3164 }
0x116b   :  { %v1603_v30 = vsel %vm457_vm5, %v3165_v29, 0.0 }
0x116c   :  { %1604 = vadd.xlane.f32.xlu1 %v1603_v30 }
0x117d   :  { %1762 = vrot.lane.b32.xlu1 %v3612_v63, %s3221_s20 }
0x117e   :  { %1842 = vrot.lane.b32.xlu0 %v3610_v61, %s3220_s1 }
0x1182   :  { %1840 = vrot.lane.b32.xlu0 %v3610_v61, %s3221_s20 }
0x11f5   :  { %v1602_v33 = vpop.xlane.xlu0 %1601 }
0x11f6   :  { %3166 = vrcp.f32 %v1602_v33  ;;  %v2110_v33 = vrot.slane %v3606_v59, %v978_v46 }
0x11f9   :  { %v1605_v15 = vpop.xlane.xlu1 %1604  ;;  %v1843_v36 = vpop.permute.xlu0 %1842 }
0x11fa   :  { %3168 = vrcp.f32 %v1605_v15 }
0x11fd   :  { %v1763_v38 = vpop.permute.xlu1 %1762  ;;  %v1841_v39 = vpop.permute.xlu0 %1840 }
0x1200   :  { %v3167_v32 = vpop.eup %3166 }
0x1201   :  { %v1608_v34 = vmul.f32 %v3167_v32, %v3163_v27 }
0x1203   :  { %2919 = vmatmul.mubr.msk.f32.vlgmr.msra.gmra.mrb[6].mxu0 %vm457_vm5, %v1608_v34 }
0x1204   :  { %v3169_v35 = vpop.eup %3168  ;;  %2927 = vmatpush3.xpose.msk.msra.mxu0 %vm305_vm4, %v1765_v14  ;;  %2928 = vmatprep.mubr.msk.f32.mxu0 %vm3217_vm3, %v3216_v7 }
0x1205   :  { %v1609_v37 = vmul.f32 %v3169_v35, %v3165_v29  ;;  %2936 = vmatprep.subr.mxu0 %v3216_v7 }
0x1207   :  { %2924 = vmatmul.mubr.msk.f32.vlgmr.msra.gmra.mrb[26].mxu1 %vm457_vm5, %v1609_v37  ;;  %2929 = vmatmul.mubr.msk.f32.vlgmr.msra.gmra.mrb[8].mxu0 %vm305_vm4, %v1763_v38 }
0x1208   :  { %2932 = vmatpush3.xpose.msk.msra.mxu1 %vm305_vm4, %v1843_v36  ;;  %2933 = vmatprep.mubr.msk.f32.mxu1 %vm3217_vm3, %v3216_v7 }
0x1209   :  { %2941 = vmatprep.subr.mxu1 %v3216_v7  ;;  %2938 = vmatprep.mubr.msk.f32.mxu0 %vm3217_vm3, %v3216_v7 }
0x120b   :  { %2934 = vmatmul.mubr.msk.f32.vlgmr.msra.gmra.mrb[28].mxu1 %vm305_vm4, %v1841_v39 }
0x120c   :  { %2943 = vmatprep.mubr.msk.f32.mxu1 %vm3217_vm3, %v3216_v7 }
0x12d6   :  { %v1682_v40 = vpop.f32.mrb[6].mxu0 }
0x12d7   :  { %v2920_v41 = vpop.f32.mrb[7].mxu0 }
0x12da   :  { %v3666_v42 = vpop.f32.mrb[26].mxu1  ;;  %v1836_v43 = vpop.f32.mrb[8].mxu0 }
0x12db   :  { %v1837_v45 = vadd.f32 %v1836_v43, %v3422_v26  ;;  %v2925_v49 = vpop.f32.mrb[27].mxu1  ;;  %v2930_v50 = vpop.f32.mrb[9].mxu0 }
0x12dd   :  { %v1918_v51 = vsel %vm457_vm5, %v1837_v45, -inf }
0x12de   :  { %1919 = vmax.xlane.f32.xlu1 %v1918_v51  ;;  %v1914_v52 = vpop.f32.mrb[28].mxu1 }
0x12df   :  { %v1915_v53 = vadd.f32 %v1914_v52, %v3426_v31  ;;  %v2935_v54 = vpop.f32.mrb[29].mxu1  ;;  %v2638_v52 = vld [vmem:[%s3806_s7 + $0x28] sm:$0xff] }
0x12e0   :  { %v2639_v54 = vld [vmem:[%s3806_s7 + $0x30] sm:$0xff] }
0x12e1   :  { %v1921_v55 = vsel %vm457_vm5, %v1915_v53, -inf }
0x12e2   :  { %1922 = vmax.xlane.f32.xlu0 %v1921_v55  ;;  %v2640_v55 = vld [vmem:[%s3806_s7 + $0x38] sm:$0xff] }
0x136b   :  { %v1920_v7 = vpop.xlane.xlu1 %1919 }
0x136c   :  { %v1924_v56 = vsub.f32 %v1837_v45, %v1920_v7  ;;  %v3090_v7 = vpack.c.bf16 %v2640_v55, %v2639_v54 }
0x136e   :  { %v1926_v10 = vmul.f32 1.442695, %v1924_v56 }
0x136f   :  { %v1923_v60 = vpop.xlane.xlu0 %1922 }
0x1370   :  { %3170 = vpow2.f32 %v1926_v10  ;;  %v1925_v62 = vsub.f32 %v1915_v53, %v1923_v60 }
0x1372   :  { %v1928_v0 = vmul.f32 1.442695, %v1925_v62 }
0x1374   :  { %3172 = vpow2.f32 %v1928_v0 }
0x137a   :  { %v3171_v26 = vpop.eup %3170 }
0x137b   :  { %v1930_v6 = vsel %vm457_vm5, %v3171_v26, 0.0 }
0x137c   :  { %1931 = vadd.xlane.f32.xlu0 %v1930_v6  ;;  %v2223_v6 = vrot.slane %v3606_v59, %v1091_v20  ;;  %v2643_v20 = vld [vmem:[%s3807_s8 + $0x40] sm:$0xff] }
0x137e   :  { %v3173_v9 = vpop.eup %3172 }
0x137f   :  { %v1933_v4 = vsel %vm457_vm5, %v3173_v9, 0.0 }
0x1380   :  { %1934 = vadd.xlane.f32.xlu1 %v1933_v4 }
0x1391   :  { %2016 = vrot.lane.b32.xlu1 %v3610_v61, %s3222_s21  ;;  %v2631_v61 = vld [vmem:[%s3805_s6 + $0x20] sm:$0xff] }
0x1392   :  { %1940 = vrot.lane.b32.xlu0 %v3612_v63, %s3222_s21  ;;  %v2632_v63 = vld [vmem:[%s3805_s6 + $0x28] sm:$0xff] }
0x1393   :  { %v3078_v17 = vpack.c.bf16 %v2632_v63, %v2631_v61  ;;  %v2646_v63 = vld [vmem:[%s3807_s8 + $0x58] sm:$0xff] }
0x1409   :  { %v1932_v31 = vpop.xlane.xlu0 %1931 }
0x140a   :  { %3174 = vrcp.f32 %v1932_v31 }
0x140d   :  { %v1935_v1 = vpop.xlane.xlu1 %1934  ;;  %v1941_v2 = vpop.permute.xlu0 %1940 }
0x140e   :  { %3176 = vrcp.f32 %v1935_v1  ;;  %2937 = vmatpush3.msra.mxu0 %v1941_v2  ;;  %v2229_v2 = vrot.slane %v3606_v59, %v1097_v21  ;;  %v2645_v21 = vld [vmem:[%s3807_s8 + $0x50] sm:$0xff] }
0x140f   :  { %3079 = vmatprep.subr.bf16.mxu0 %v3078_v17 }
0x1411   :  { %v2017_v5 = vpop.permute.xlu1 %2016 }
0x1412   :  { %2942 = vmatpush3.msra.mxu1 %v2017_v5 }
0x1414   :  { %v3175_v11 = vpop.eup %3174 }
0x1415   :  { %v1938_v12 = vmul.f32 %v3175_v11, %v3171_v26 }
0x1417   :  { %2939 = vmatmul.mubr.msk.f32.vlgmr.msra.gmra.mrb[10].mxu0 %vm457_vm5, %v1938_v12 }
0x1418   :  { %v3177_v13 = vpop.eup %3176  ;;  %3081 = vmatpush3.bf16.msra.mxu0 %v3078_v17  ;;  %v3098_v17 = vpack.c.bf16 %v2646_v63, %v2645_v21 }
0x1419   :  { %v1939_v16 = vmul.f32 %v3177_v13, %v3173_v9  ;;  %3083 = vmatprep.subr.bf16.mxu0 %v3082_v22 }
0x141b   :  { %2944 = vmatmul.mubr.msk.f32.vlgmr.msra.gmra.mrb[30].mxu1 %vm457_vm5, %v1939_v16  ;;  %v2644_v16 = vld [vmem:[%s3807_s8 + $0x48] sm:$0xff] }
0x141c   :  { %3085 = vmatpush3.bf16.msra.mxu0 %v3082_v22  ;;  %v3094_v61 = vpack.c.bf16 %v2644_v16, %v2643_v20  ;;  %v3102_v22 = vpack.c.bf16 %v2648_v19, %v2647_v18  ;;  %v2465_v18 = vrot.slane %v3606_v59, %v1332_v47  ;;  %v2653_v47 = vld [vmem:[%s3810_s11] ss:$0 sm:$0xff] }
0x141e   :  { %3095 = vmatprep.subr.bf16.mxu0 %v3094_v61 }
0x14ea   :  { %v2012_v23 = vpop.f32.mrb[10].mxu0 }
0x14eb   :  { %2094 = vrot.lane.b32.xlu1 %v2012_v23, %s3223_s27  ;;  %v2940_v24 = vpop.f32.mrb[11].mxu0  ;;  %v2649_v23 = vld [vmem:[%s3807_s8 + $0x70] sm:$0xff] }
0x14ec   :  { %v2650_v24 = vld [vmem:[%s3807_s8 + $0x78] sm:$0xff] }
0x14ee   :  { %v2088_v25 = vpop.f32.mrb[30].mxu1 }
0x14ef   :  { %2096 = vrot.lane.b32.xlu0 %v2088_v25, %s3223_s27  ;;  %v2945_v27 = vpop.f32.mrb[31].mxu1  ;;  %v3106_v25 = vpack.c.bf16 %v2650_v24, %v2649_v23 }
0x14f0   :  { %v2240_v27 = vrot.slane %v3606_v59, %v1107_v44 }
0x155d   :  { %v2095_v28 = vpop.permute.xlu1 %2094 }
0x155e   :  { %v2100_v29 = vsel %vm305_vm4, %v1682_v40, %v2095_v28 }
0x155f   :  { %2954 = vmatprep.mubr.msk.f32.mxu0 %vm152_vm2, %v2100_v29 }
0x1561   :  { %v2097_v30 = vpop.permute.xlu0 %2096 }
0x1562   :  { %v2101_v14 = vsel %vm305_vm4, %v3666_v42, %v2097_v30 }
0x1563   :  { %2955 = vmatmul.mubr.msk.f32.vlgmr.msra.gmra.mrb[12].mxu0 %vm152_vm2, %v2101_v14 }
0x1564   :  { %3097 = vmatpush3.bf16.msra.mxu0 %v3094_v61 }
0x1565   :  { %3099 = vmatprep.subr.bf16.mxu0 %v3098_v17 }
0x1568   :  { %3101 = vmatpush3.bf16.msra.mxu0 %v3098_v17 }
0x1569   :  { %3103 = vmatprep.subr.bf16.mxu0 %v3102_v22 }
0x156c   :  { %3105 = vmatpush3.bf16.msra.mxu0 %v3102_v22 }
0x156d   :  { %3107 = vmatprep.subr.bf16.mxu0 %v3106_v25 }
0x1570   :  { %3109 = vmatpush3.bf16.msra.mxu0 %v3106_v25  ;;  %v2471_v25 = vrot.slane %v3606_v59, %v1338_v48 }
0x1636   :  { %v2956_v15 = vpop.f32.mrb[12].mxu0 }
0x1637   :  { %v2189_v32 = vadd.f32 %v2956_v15, %v2110_v33  ;;  %v2183_v34 = vpop.f32.mrb[13].mxu0 }
0x1638   :  { %v2184_v35 = vadd.f32 %v2183_v34, %v2110_v33 }
0x1639   :  { %v2193_v36 = vadd.f32 %v2189_v32, %v3595_v58 }
0x163a   :  { %v2192_v37 = vadd.f32 %v2184_v35, %v3593_v57  ;;  %v2637_v57 = vld [vmem:[%s3806_s7 + $0x20] sm:$0xff] }
0x163b   :  { %v2197_v38 = vsel %vm152_vm2, %v2193_v36, 0.0  ;;  %v3086_v53 = vpack.c.bf16 %v2638_v52, %v2637_v57 }
0x163c   :  { %2198 = vadd.xlane.f32.xlu0 %v2197_v38  ;;  %v2194_v39 = vsel %vm152_vm2, %v2192_v37, 0.0 }
0x163d   :  { %2195 = vadd.xlane.f32.xlu1 %v2194_v39  ;;  %3087 = vmatprep.subr.bf16.mxu1 %v3086_v53 }
0x163e   :  { %3089 = vmatpush3.bf16.msra.mxu1 %v3086_v53 }
0x163f   :  { %3091 = vmatprep.subr.bf16.mxu1 %v3090_v7 }
0x1642   :  { %3093 = vmatpush3.bf16.msra.mxu1 %v3090_v7 }
0x16c9   :  { %v2199_v40 = vpop.xlane.xlu0 %2198 }
0x16ca   :  { %v2201_v41 = vmul.f32 0.03125, %v2199_v40  ;;  %v2196_v42 = vpop.xlane.xlu1 %2195 }
0x16cb   :  { %v2200_v43 = vmul.f32 0.03125, %v2196_v42 }
0x16cc   :  { %v2203_v45 = vsub.f32 %v2193_v36, %v2201_v41 }
0x16cd   :  { %v2202_v46 = vsub.f32 %v2192_v37, %v2200_v43 }
0x16ce   :  { %v2205_v49 = vmul.f32 %v2203_v45, %v2203_v45 }
0x16cf   :  { %v2204_v50 = vmul.f32 %v2202_v46, %v2202_v46 }
0x16d0   :  { %v2209_v51 = vsel %vm152_vm2, %v2205_v49, 0.0 }
0x16d1   :  { %2210 = vadd.xlane.f32.xlu1 %v2209_v51  ;;  %v2206_v58 = vsel %vm152_vm2, %v2204_v50, 0.0  ;;  %v2352_v51 = vrot.slane %v3606_v59, %v1218_v3 }
0x16d2   :  { %2207 = vadd.xlane.f32.xlu0 %v2206_v58 }
0x175e   :  { %v2211_v56 = vpop.xlane.xlu1 %2210 }
0x175f   :  { %v2213_v10 = vmul.f32 0.03125, %v2211_v56  ;;  %v2208_v60 = vpop.xlane.xlu0 %2207 }
0x1760   :  { %v2212_v62 = vmul.f32 0.03125, %v2208_v60 }
0x1761   :  { %v2215_v0 = vadd.f32 1e-12, %v2213_v10 }
0x1762   :  { %v2214_v26 = vadd.f32 1e-12, %v2212_v62 }
0x1763   :  { %3178 = vrsqrt.f32 %v2215_v0 }
0x1764   :  { %3180 = vrsqrt.f32 %v2214_v26 }
0x176d   :  { %v3179_v9 = vpop.eup %3178 }
0x176e   :  { %v3181_v4 = vpop.eup %3180  ;;  %v2219_v31 = vmul.f32 %v3179_v9, %v2203_v45 }
0x176f   :  { %v2218_v1 = vmul.f32 %v3181_v4, %v2202_v46 }
0x1770   :  { %v2225_v5 = vmul.f32 %v2223_v6, %v2219_v31 }
0x1771   :  { %v2224_v11 = vmul.f32 %v2223_v6, %v2218_v1  ;;  %v2474_v1 = vld [vmem:[%s3809_s10] sm:$0xff] }
0x1772   :  { %v2231_v13 = vadd.f32 %v2229_v2, %v2225_v5 }
0x1773   :  { %v2230_v12 = vadd.f32 %v2229_v2, %v2224_v11  ;;  %v2475_v2 = vld [vmem:[%s3809_s10 + $0x8] sm:$0xff]  ;;  %v2476_v11 = vld [vmem:[%s3809_s10 + $0x10] sm:$0xff] }
0x1774   :  { %v3110_v5 = vpack.c.bf16 %v2475_v2, %v2474_v1 }
0x1775   :  { %2965 = vmatprep.mubr.msk.f32.mxu1 %vm152_vm2, %v2230_v12 }
0x1776   :  { %2966 = vmatmul.mubr.msk.f32.vlgmr.msra.gmra.mrb[32].mxu1 %vm152_vm2, %v2231_v13  ;;  %3111 = vmatprep.subr.bf16.mxu1 %v3110_v5 }
0x1777   :  { %3113 = vmatpush3.bf16.msra.mxu1 %v3110_v5 }
0x1849   :  { %v2967_v28 = vpop.f32.mrb[32].mxu1 }
0x184a   :  { %v2319_v29 = vadd.f32 %v2967_v28, %v2240_v27  ;;  %v2313_v30 = vpop.f32.mrb[33].mxu1 }
0x184b   :  { %v2314_v14 = vadd.f32 %v2313_v30, %v2240_v27 }
0x184c   :  { %v2323_v33 = vmul.f32 %v2319_v29, %v2319_v29 }
0x184d   :  { %v2322_v15 = vmul.f32 %v2314_v14, %v2314_v14 }
0x184e   :  { %v2325_v32 = vmul.f32 %v2323_v33, %v2319_v29 }
0x184f   :  { %v2324_v34 = vmul.f32 %v2322_v15, %v2314_v14 }
0x1850   :  { %v2327_v35 = vmul.f32 0.044715, %v2325_v32 }
0x1851   :  { %v2326_v36 = vmul.f32 0.044715, %v2324_v34 }
0x1852   :  { %v2329_v37 = vadd.f32 %v2327_v35, %v2319_v29 }
0x1853   :  { %v2328_v38 = vadd.f32 %v2326_v36, %v2314_v14 }
0x1854   :  { %v2331_v39 = vmul.f32 0.7978846, %v2329_v37 }
0x1855   :  { %v2330_v40 = vmul.f32 0.7978846, %v2328_v38 }
0x1856   :  { %3182 = vtanh.f32 %v2331_v39 }
0x1857   :  { %3184 = vtanh.f32 %v2330_v40 }
0x1860   :  { %v3183_v41 = vpop.eup %3182 }
0x1861   :  { %v3185_v42 = vpop.eup %3184  ;;  %v2335_v43 = vadd.f32 1.0, %v3183_v41 }
0x1862   :  { %v2334_v44 = vadd.f32 1.0, %v3185_v42 }
0x1863   :  { %v2337_v45 = vmul.f32 0.5, %v2335_v43 }
0x1864   :  { %v2336_v46 = vmul.f32 0.5, %v2334_v44 }
0x1865   :  { %v2339_v50 = vmul.f32 %v2337_v45, %v2319_v29 }
0x1866   :  { %v2338_v49 = vmul.f32 %v2336_v46, %v2314_v14 }
0x1868   :  { %2984 = vmatprep.mubr.msk.f32.mxu0 %vm1220_vm6, %v2338_v49 }
0x1869   :  { %2985 = vmatmul.mubr.msk.f32.vlgmr.msra.gmra.mrb[14].mxu0 %vm1220_vm6, %v2339_v50 }
0x193c   :  { %v2986_v58 = vpop.f32.mrb[14].mxu0 }
0x193d   :  { %v2431_v57 = vadd.f32 %v2986_v58, %v2352_v51  ;;  %v2425_v52 = vpop.f32.mrb[15].mxu0 }
0x193e   :  { %v2426_v53 = vadd.f32 %v2425_v52, %v2352_v51 }
0x193f   :  { %v2435_v54 = vadd.f32 %v2431_v57, %v2231_v13 }
0x1940   :  { %v2434_v55 = vadd.f32 %v2426_v53, %v2230_v12  ;;  %v2477_v12 = vld [vmem:[%s3809_s10 + $0x18] sm:$0xff] }
0x1941   :  { %v2439_v7 = vsel %vm152_vm2, %v2435_v54, 0.0  ;;  %v3114_v13 = vpack.c.bf16 %v2477_v12, %v2476_v11 }
0x1942   :  { %2440 = vadd.xlane.f32.xlu1 %v2439_v7  ;;  %v2436_v56 = vsel %vm152_vm2, %v2434_v55, 0.0 }
0x1943   :  { %2437 = vadd.xlane.f32.xlu0 %v2436_v56  ;;  %3115 = vmatprep.subr.bf16.mxu1 %v3114_v13 }
0x1944   :  { %3117 = vmatpush3.bf16.msra.mxu1 %v3114_v13 }
0x19cf   :  { %v2441_v10 = vpop.xlane.xlu1 %2440 }
0x19d0   :  { %v2443_v60 = vmul.f32 0.03125, %v2441_v10  ;;  %v2438_v62 = vpop.xlane.xlu0 %2437 }
0x19d1   :  { %v2442_v0 = vmul.f32 0.03125, %v2438_v62 }
0x19d2   :  { %v2445_v26 = vsub.f32 %v2435_v54, %v2443_v60 }
0x19d3   :  { %v2444_v6 = vsub.f32 %v2434_v55, %v2442_v0 }
0x19d4   :  { %v2447_v9 = vmul.f32 %v2445_v26, %v2445_v26 }
0x19d5   :  { %v2446_v3 = vmul.f32 %v2444_v6, %v2444_v6 }
0x19d6   :  { %v2451_v4 = vsel %vm152_vm2, %v2447_v9, 0.0 }
0x19d7   :  { %2452 = vadd.xlane.f32.xlu1 %v2451_v4  ;;  %v2448_v31 = vsel %vm152_vm2, %v2446_v3, 0.0 }
0x19d8   :  { %2449 = vadd.xlane.f32.xlu0 %v2448_v31 }
0x1a64   :  { %v2453_v20 = vpop.xlane.xlu1 %2452 }
0x1a65   :  { %v2455_v16 = vmul.f32 0.03125, %v2453_v20  ;;  %v2450_v61 = vpop.xlane.xlu0 %2449 }
0x1a66   :  { %v2454_v21 = vmul.f32 0.03125, %v2450_v61 }
0x1a67   :  { %v2457_v63 = vadd.f32 1e-12, %v2455_v16 }
0x1a68   :  { %v2456_v17 = vadd.f32 1e-12, %v2454_v21 }
0x1a69   :  { %3186 = vrsqrt.f32 %v2457_v63 }
0x1a6a   :  { %3188 = vrsqrt.f32 %v2456_v17 }
0x1a73   :  { %v3187_v19 = vpop.eup %3186 }
0x1a74   :  { %v3189_v22 = vpop.eup %3188  ;;  %v2461_v23 = vmul.f32 %v3187_v19, %v2445_v26 }
0x1a75   :  { %v2460_v24 = vmul.f32 %v3189_v22, %v2444_v6 }
0x1a76   :  { %v2467_v27 = vmul.f32 %v2465_v18, %v2461_v23 }
0x1a77   :  { %v2466_v28 = vmul.f32 %v2465_v18, %v2460_v24 }
0x1a78   :  { %v2473_v30 = vadd.f32 %v2471_v25, %v2467_v27 }
0x1a79   :  { %v2472_v29 = vadd.f32 %v2471_v25, %v2466_v28 }
0x1a7b   :  { %2995 = vmatprep.mubr.msk.f32.mxu1 %vm152_vm2, %v2472_v29 }
0x1a7c   :  { %2996 = vmatmul.mubr.msk.f32.vlgmr.msra.gmra.mrb[34].mxu1 %vm152_vm2, %v2473_v30 }
0x1b4f   :  { %v2997_v14 = vpop.f32.mrb[34].mxu1 }
0x1b50   :  { %v2563_v33 = vadd.f32 %v2997_v14, %v2653_v47  ;;  %v2557_v15 = vpop.f32.mrb[35].mxu1 }
0x1b51   :  { %v2558_v8 = vadd.f32 %v2653_v47, %v2557_v15 }
0x1b52   :  { %v2567_v48 = vrot.slane %v2563_v33, 7 }
0x1b54   :  { %v2570_v59 = vsel %vm2569_vm7, %v2558_v8, %v2567_v48 }
0x1b55   :  { %2571 = vst [vmem:[#allocation2] sm:$0x3] %v2570_v59 }
0x1b56   :  { %3201 = shalt.err (!%p3198_p4)
}
0x1b57   :  { %s3202_s18 = scalar_lea.hbm %s3811_s12, 32 }
0x1b58   :  { %p3203_p5 = scmp.ne.s32.totalorder %s3811_s12, %s3202_s18  ;;  %p3206_p6 = scmp.lt.u32.totalorder %s3202_s18, %s3811_s12 }
0x1b5a   :  { %p3208_p7 = pnand %p3206_p6, %p3203_p5 }
0x1b5c   :  { %3211 = shalt.err (!%p3208_p7)
}
0x1b5d   :  { %2581 = dma.vmem_to_hbm [thread:$0]  %s2579_s16, 32, %s3811_s12, [#allocation3]  }
0x1b5e   :  { %3212 = dma.done.wait [#allocation3], 32  }
0x1b5f   :  { %3213 = vsyncadd [#allocation3], 4294967264 }
0x1b60   :  { %2585 = vsyncpa [#allocation3], 1 }

</bundles_post_ra>
